<compile_context>
chip_gen: v6e
topology: v6e:2x2x1
jax: 0.10.0
libtpu: 0.0.40
codegen_flags: <defaults>
</compile_context>

<pallas_src>
import jax
import jax.numpy as jnp
from jax import lax
from jax.experimental import pallas as pl
from jax.experimental.pallas import tpu as pltpu

# ------------------------- small, deterministic configuration -------------------------
BS = 2
GF_DIM = 64              # global_feature_dim (2048 in the original)
GCN_IN0 = 32             # gcn_in_dim[0]   (256 in the original)
GCN_OUT_LAST = 32        # gcn_out_dim[-1] (64 in the original)
V_IN = 64                # self.vNum_in
V_OUT = 32               # self.vNum_out
V_MANO = 96              # vertex_num (778 in the original)
N_JOINTS = 21
IMG_SIZE = 256
LN_EPS = 1e-6
N_GF = GCN_IN0 - 3       # 29 channels produced by the gf projection
UPJ = V_MANO + N_JOINTS  # 117 rows: [upsampled verts ; regressed joints]
UPJ_PAD = 120            # padded to a sublane multiple for aligned row slicing
NHB = 8                  # (hand,batch) rows padded 4 -> 8 so every contraction dim >= 8

# ParamRegressor dims (original: [2334,1024,512] / [512,128,96] / [512,128,10])
REG_IN = V_MANO * 3
REG_H1, REG_H2 = 256, 128
POSE_H, POSE_OUT = 64, 16 * 6
SHAPE_H, SHAPE_OUT = 64, 10
HEAD_OUT = POSE_OUT + SHAPE_OUT


def _hardswish(y):
    # nn.Hardswish: x * relu6(x + 3) / 6
    return y * jnp.clip(y + 3.0, 0.0, 6.0) * (1.0 / 6.0)


# ----------------------------------- Pallas kernel -----------------------------------
def _decoder_fused_kernel(x_ref, gfw_ref, gfb_ref, gfg_ref, gfbeta_ref,
                          gg_ref, rrep_ref, peff_ref, copar_ref, cob_ref,
                          avg_ref, parb_ref, upj_ref, combb_ref,
                          m1g_ref, h1c_ref, w2_ref, b2_ref,
                          hw1_ref, hb1_ref, hw2_ref, hb2_ref,
                          verts_ref, par_ref, comb_ref, reg_ref):
    x = x_ref[...]                                               # (BS, GF_DIM)

    # --- gf_layer_{left,right}: Linear(GF_DIM->29) per hand, results row-stacked
    #     hand-major as (NHB, 32) (rows 2*BS..NHB-1 are zero padding so that every
    #     downstream contraction dim is >= 8).  Row layout gives a single-mask LayerNorm
    #     and avoids any lane-offset relayout of a hand-concatenated projection.
    yl = jnp.dot(x, gfw_ref[0], preferred_element_type=jnp.float32)        # (BS, 32)
    yr = jnp.dot(x, gfw_ref[1], preferred_element_type=jnp.float32)        # (BS, 32)
    y = jnp.concatenate(
        [yl, yr, jnp.zeros((NHB - 2 * BS, GCN_IN0), jnp.float32)], axis=0) + gfb_ref[...]

    # LayerNorm(29, eps=1e-6): stats over the first 29 lanes only; padded gamma/beta
    # lanes are zero so lanes 29..31 of gfn stay zero (and Gg has zero rows there too).
    lane = lax.broadcasted_iota(jnp.int32, (1, GCN_IN0), 1)
    mask = lane < N_GF
    inv_n = 1.0 / float(N_GF)
    mu = jnp.sum(jnp.where(mask, y, 0.0), axis=-1, keepdims=True) * inv_n
    d = jnp.where(mask, y - mu, 0.0)
    var = jnp.sum(d * d, axis=-1, keepdims=True) * inv_n
    gfn = d * lax.rsqrt(var + LN_EPS) * gfg_ref[...] + gfbeta_ref[...]     # (NHB, 32)

    # --- DualGraph stand-in (shared linear), factorized:
    #     ff[(h,b), u, :] = gfn[(h,b)] @ gcn_w[:29] + (pe_pooled[h,u] @ gcn_w[29:] + gcn_b)
    # TODO(synk): DualGraph (Chebyshev graph convs + cross-hand/image attention) has no
    # provided implementation; this linear stand-in is what the folds below rely on.
    gfc = jnp.dot(gfn, gg_ref[...], preferred_element_type=jnp.float32)    # (NHB, 32)
    ff = jnp.dot(rrep_ref[...], gfc,
                 preferred_element_type=jnp.float32) + peff_ref[...]       # (128, 32)

    # --- merged coord_head | params_head on the stacked per-vertex features (one matmul)
    yh = jnp.dot(ff, copar_ref[...], preferred_element_type=jnp.float32)   # (128, 6)
    verts_ref[...] = yh + cob_ref[...]            # lanes 0:3 = coarse verts3d (+ co_b)

    # avg_head applied AFTER the 6-lane projection (block-diag over hand*batch), with the
    # avg_head bias pre-folded into the params bias (lanes 3:6 are the params head).
    par_ref[...] = jnp.dot(avg_ref[...], yh,
                           preferred_element_type=jnp.float32) + parb_ref[...]   # (4, 6)

    # fused unsample_layer + J_regressor (JregUp = Jreg @ W_up precomputed), block-diag
    # over hand*batch, co_b folded into the precomputed additive constant.
    comb_ref[...] = jnp.dot(upj_ref[...], yh,
                            preferred_element_type=jnp.float32) + combb_ref[...]  # (480, 6)

    # --- ParamRegressor for both hands, fused into the same call.  Its first Linear is
    # folded through the (linear) upsample+coord chain, so it reads the in-VMEM gfc
    # directly: h1 = gfc @ (co_w @ M1) + h1_const  (exact algebra on the stand-in).
    # TODO(synk): with a real DualGraph this fold must be replaced by a transpose of v3d.
    h = _hardswish(jnp.dot(gfc.astype(jnp.bfloat16), m1g_ref[...],
                           preferred_element_type=jnp.float32) + h1c_ref[...])    # (NHB, 256)
    h = _hardswish(jnp.dot(h.astype(jnp.bfloat16), w2_ref[...],
                           preferred_element_type=jnp.float32) + b2_ref[...])     # (NHB, 128)
    h = _hardswish(jnp.dot(h.astype(jnp.bfloat16), hw1_ref[...],
                           preferred_element_type=jnp.float32) + hb1_ref[...])    # (NHB, 128)
    reg_ref[...] = jnp.dot(h.astype(jnp.bfloat16), hw2_ref[...],
                           preferred_element_type=jnp.float32) + hb2_ref[...]     # (NHB, 106)


# ------------------------------------ kernel wrapper ------------------------------------
def _run_fused(kp, x):
    out_shape = (
        jax.ShapeDtypeStruct((2 * BS * V_OUT, 6), jnp.float32),      # coarse verts (lanes 0:3)
        jax.ShapeDtypeStruct((2 * BS, 6), jnp.float32),              # params (lanes 3:6)
        jax.ShapeDtypeStruct((2 * BS * UPJ_PAD, 6), jnp.float32),    # upsampled+joints (lanes 0:3)
        jax.ShapeDtypeStruct((NHB, HEAD_OUT), jnp.float32),          # regressor (rows 0:4)
    )
    return pl.pallas_call(
        _decoder_fused_kernel,
        out_shape=out_shape,
        cost_estimate=pl.CostEstimate(flops=2_000_000, transcendentals=8,
                                      bytes_accessed=450_000),
        compiler_params=pltpu.CompilerParams(vmem_limit_bytes=32 * 1024 * 1024),
    )(x, kp['gf_w'], kp['gf_b'], kp['gf_g'], kp['gf_beta'],
      kp['gg'], kp['rrep'], kp['pe_ff'], kp['copar'], kp['cob6'],
      kp['avg_blk'], kp['parb6'], kp['upj_blk'], kp['combb6'],
      kp['m1g'], kp['h1_const'], kp['reg_w2'], kp['reg_b2'],
      kp['head_w1'], kp['head_b1'], kp['head_w2'], kp['head_b2'])


# ----------------------------------- plain-JAX glue -----------------------------------
def rot6d_to_rotmat(x):
    x = x.reshape(-1, 3, 2)
    a1, a2 = x[..., 0], x[..., 1]
    b1 = a1 / jnp.maximum(jnp.linalg.norm(a1, axis=-1, keepdims=True), 1e-12)
    dot = jnp.sum(b1 * a2, axis=-1, keepdims=True)
    b2u = a2 - dot * b1
    b2 = b2u / jnp.maximum(jnp.linalg.norm(b2u, axis=-1, keepdims=True), 1e-12)
    b3 = jnp.cross(b1, b2)
    return jnp.stack((b1, b2, b3), axis=-1)


def projection_batch(scale, trans2d, label3d, img_size=IMG_SIZE):
    # TODO(synk): projection_batch source was not provided; standard IntagHand weak-perspective.
    s = scale * img_size / 2.0
    t = trans2d * img_size / 2.0 + img_size / 2.0
    return s[:, None, None] * label3d[..., :2] + t[:, None, :]


# ---------------------------------- parameter handling ----------------------------------
def init_params(key):
    ks = iter(jax.random.split(key, 32))

    def xavier(shape):
        fan_out, fan_in = shape
        lim = (6.0 / (fan_in + fan_out)) ** 0.5
        return jax.random.uniform(next(ks), shape, jnp.float32, -lim, lim)

    def zeros(n):
        return jnp.zeros((n,), jnp.float32)

    p = {}
    for side in ('left', 'right'):
        p[f'gf_{side}_w'] = xavier((N_GF, GF_DIM))
        p[f'gf_{side}_b'] = zeros(N_GF)
        p[f'gf_{side}_ln_g'] = jnp.ones((N_GF,), jnp.float32)
        p[f'gf_{side}_ln_b'] = zeros(N_GF)
    p['dualgcn_w'] = xavier((GCN_OUT_LAST, GCN_IN0)); p['dualgcn_b'] = zeros(GCN_OUT_LAST)
    p['avg_w'] = xavier((1, V_OUT)); p['avg_b'] = zeros(1)
    p['params_w'] = xavier((3, GCN_OUT_LAST)); p['params_b'] = zeros(3)
    p['coord_w'] = xavier((3, GCN_OUT_LAST)); p['coord_b'] = zeros(3)
    p['up_w'] = xavier((V_MANO, V_OUT))
    # TODO(synk): the true MANO J_regressor is a model asset; deterministic row-normalized
    # surrogate of the same shape/semantics (joints = Jreg @ verts) is used.
    jr = jax.random.uniform(next(ks), (N_JOINTS, V_MANO), jnp.float32)
    p['jreg'] = jr / jnp.sum(jr, axis=1, keepdims=True)
    p['reg_w1'] = xavier((REG_H1, REG_IN)); p['reg_b1'] = zeros(REG_H1)
    p['reg_w2'] = xavier((REG_H2, REG_H1)); p['reg_b2'] = zeros(REG_H2)
    p['pose_w1'] = xavier((POSE_H, REG_H2)); p['pose_b1'] = zeros(POSE_H)
    p['pose_w2'] = xavier((POSE_OUT, POSE_H)); p['pose_b2'] = zeros(POSE_OUT)
    p['shape_w1'] = xavier((SHAPE_H, REG_H2)); p['shape_b1'] = zeros(SHAPE_H)
    p['shape_w2'] = xavier((SHAPE_OUT, SHAPE_H)); p['shape_b2'] = zeros(SHAPE_OUT)
    # TODO(synk): dense_coor buffer + GCN_vert_convert + graph_avg_pool are external graph
    # utilities; deterministic per-vertex coordinates in [-1, 1] stand in for them.
    p['pel'] = jax.random.uniform(next(ks), (V_IN, 3), jnp.float32) * 2.0 - 1.0
    p['per'] = jax.random.uniform(next(ks), (V_IN, 3), jnp.float32) * 2.0 - 1.0
    return p


def pack_params(p):
    """One-time packing: transpose to (in,out), pad, fold biases / J_regressor / the
    ParamRegressor first layer, build block-diagonal (hand,batch) weights and merged
    regressor heads, and cast the regressor matmul weights to bf16."""
    kp = {}
    gcn_w = p['dualgcn_w'].T                      # (32, 32) (in, out)
    gcn_b = p['dualgcn_b'].reshape(1, -1)         # (1, 32)
    co_w = p['coord_w'].T                         # (32, 3)
    co_b = p['coord_b'].reshape(1, 3)
    par_w = p['params_w'].T                       # (32, 3)
    par_b = p['params_b'].reshape(1, 3)
    avg_w = p['avg_w'].reshape(V_OUT)             # (32,)
    avg_b = p['avg_b'][0]
    up_w = p['up_w']                              # (96, 32)
    jreg = p['jreg']                              # (21, 96)

    # per-hand gf projection (pre-transposed, padded to 32 lanes) + per-row LN params
    gfw, gfb, gfg, gfbeta, pe_pool = [], [], [], [], []
    for side, pe_key in (('left', 'pel'), ('right', 'per')):
        gfw.append(jnp.pad(p[f'gf_{side}_w'].T, ((0, 0), (0, 3))))          # (GF_DIM, 32)
        gfb.append(jnp.pad(p[f'gf_{side}_b'], (0, 3)).reshape(1, GCN_IN0))
        gfg.append(jnp.pad(p[f'gf_{side}_ln_g'], (0, 3)).reshape(1, GCN_IN0))
        gfbeta.append(jnp.pad(p[f'gf_{side}_ln_b'], (0, 3)).reshape(1, GCN_IN0))
        # graph_avg_pool stand-in (V_IN -> V_OUT) applied to the PE once, at pack time
        pe_pool.append(p[pe_key].reshape(V_OUT, V_IN // V_OUT, 3).mean(axis=1))
    kp['gf_w'] = jnp.stack(gfw)                                             # (2, GF_DIM, 32)

    def rows_hand_major(arrs):   # per-hand (1,C) -> (NHB, C), hand-major, zero padded rows
        tiled = [jnp.tile(a, (BS, 1)) for a in arrs]
        pad = jnp.zeros((NHB - 2 * BS, arrs[0].shape[1]), jnp.float32)
        return jnp.concatenate(tiled + [pad], axis=0)

    kp['gf_b'] = rows_hand_major(gfb)
    kp['gf_g'] = rows_hand_major(gfg)
    kp['gf_beta'] = rows_hand_major(gfbeta)

    # DualGraph stand-in factorization: gf-channel part of gcn_w, PE+bias constant per row
    kp['gg'] = jnp.concatenate(
        [gcn_w[:N_GF], jnp.zeros((GCN_IN0 - N_GF, GCN_OUT_LAST), jnp.float32)], axis=0)
    pe_contrib = [pe_pool[i] @ gcn_w[N_GF:] + gcn_b for i in range(2)]      # (V_OUT, 32)
    kp['pe_ff'] = jnp.concatenate(
        [jnp.tile(pc, (BS, 1)) for pc in pe_contrib], axis=0)               # (128, 32)

    # repeat matrix: (hand,batch) row -> its 32 vertex rows (padded to NHB columns)
    rrep = jnp.kron(jnp.eye(2 * BS, dtype=jnp.float32), jnp.ones((V_OUT, 1), jnp.float32))
    kp['rrep'] = jnp.pad(rrep, ((0, 0), (0, NHB - 2 * BS)))                 # (128, NHB)

    # merged coord | params head; co_b in lanes 0:3, folded params bias in lanes 3:6
    kp['copar'] = jnp.concatenate([co_w, par_w], axis=1)                    # (32, 6)
    kp['cob6'] = jnp.concatenate([co_b, jnp.zeros((1, 3), jnp.float32)], axis=1)
    kp['avg_blk'] = jnp.kron(jnp.eye(2 * BS, dtype=jnp.float32),
                             avg_w.reshape(1, V_OUT))                       # (4, 128)
    par_b_fold = par_b + avg_b * jnp.sum(par_w, axis=0, keepdims=True)
    kp['parb6'] = jnp.concatenate([jnp.zeros((1, 3), jnp.float32), par_b_fold], axis=1)

    # fused unsample_layer + J_regressor (block-diag over hand*batch), co_b folded through
    upj = jnp.concatenate([up_w, jreg @ up_w], axis=0)                      # (117, 32)
    upj = jnp.pad(upj, ((0, UPJ_PAD - UPJ), (0, 0)))                        # (120, 32)
    kp['upj_blk'] = jnp.kron(jnp.eye(2 * BS, dtype=jnp.float32), upj)       # (480, 128)
    comb_bias = kp['upj_blk'] @ jnp.broadcast_to(co_b, (2 * BS * V_OUT, 3)) # (480, 3)
    kp['combb6'] = jnp.concatenate(
        [comb_bias, jnp.zeros((2 * BS * UPJ_PAD, 3), jnp.float32)], axis=1)

    # ParamRegressor: first Linear folded through upsample+coord (exact on the stand-in)
    W1 = p['reg_w1'].T                            # (288, 256), row order = v*3 + c
    b1 = p['reg_b1'].reshape(1, -1)
    W1r = W1.reshape(V_MANO, 3, REG_H1)
    up_rowsum = up_w.sum(axis=1)                  # (96,)
    M1 = jnp.einsum('v,vco->co', up_rowsum, W1r)  # (3, 256)
    kp['m1g'] = (co_w @ M1).astype(jnp.bfloat16)  # (32, 256)
    h1c = []
    for i in range(2):
        Bco = pe_contrib[i] @ co_w + co_b         # (32, 3) constant per-vertex verts part
        v3d_const = up_w @ Bco                    # (96, 3)
        h1c.append(jnp.tile(v3d_const.reshape(1, -1) @ W1 + b1, (BS, 1)))   # (BS, 256)
    h1c.append(jnp.zeros((NHB - 2 * BS, REG_H1), jnp.float32))
    kp['h1_const'] = jnp.concatenate(h1c, axis=0)                           # (NHB, 256)

    kp['reg_w2'] = p['reg_w2'].T.astype(jnp.bfloat16)
    kp['reg_b2'] = p['reg_b2'].reshape(1, -1)
    # pose / shape heads merged: one matmul per layer for both heads
    kp['head_w1'] = jnp.concatenate(
        [p['pose_w1'].T, p['shape_w1'].T], axis=1).astype(jnp.bfloat16)
    kp['head_b1'] = jnp.concatenate([p['pose_b1'], p['shape_b1']]).reshape(1, -1)
    w4 = jnp.zeros((POSE_H + SHAPE_H, HEAD_OUT), jnp.float32)
    w4 = w4.at[:POSE_H, :POSE_OUT].set(p['pose_w2'].T)
    w4 = w4.at[POSE_H:, POSE_OUT:].set(p['shape_w2'].T)
    kp['head_w2'] = w4.astype(jnp.bfloat16)
    kp['head_b2'] = jnp.concatenate([p['pose_b2'], p['shape_b2']]).reshape(1, -1)
    return kp


# -------------------------------------- forward --------------------------------------
@jax.jit
def decoder_forward(kp, x, fmaps):
    bs = x.shape[0]
    assert bs == BS and x.shape[1] == GF_DIM
    fmaps = fmaps[:-1]
    # TODO(synk): fmaps only feed the DualGraph image<->graph attention (not reproduced).
    del fmaps

    # ONE fused pallas_call for the whole forward (both hands + ParamRegressor)
    verts6, par6, comb6, reg8 = _run_fused(kp, x)

    verts3d_all = verts6[:, :3].reshape(2, BS, V_OUT, 3)
    par = par6[:, 3:6].reshape(2, BS, 3)
    comb = comb6[:, :3].reshape(2, BS, UPJ_PAD, 3)
    v3d = comb[:, :, :V_MANO]                       # upsampled vertices
    j3d = comb[:, :, V_MANO:UPJ]                    # regressed joints
    reg_out = reg8[:2 * BS]                         # drop padded rows

    scale = {'left': par[0, :, 0], 'right': par[1, :, 0]}
    trans2d = {'left': par[0, :, 1:], 'right': par[1, :, 1:]}
    verts3d = {'left': verts3d_all[0], 'right': verts3d_all[1]}
    verts2d = {h: projection_batch(scale[h], trans2d[h], verts3d[h]) for h in ('left', 'right')}

    root_rel = j3d[1, :, 0] - j3d[0, :, 0]

    rotmat = rot6d_to_rotmat(reg_out[:, :POSE_OUT]).reshape(2, BS, 16, 3, 3)
    shp = (jnp.tanh(reg_out[:, POSE_OUT:]) * 3.0).reshape(2, BS, SHAPE_OUT)

    # TODO(synk): rotation_matrix_to_angle_axis, rodrigues_batch and the MANO differentiable
    # layers (mano_left_layer / mano_right_layer), wrist-centering and bone-length rescale
    # are external model assets and are not reproduced.
    result = {'v3d_left': v3d[0], 'v3d_right': v3d[1], 'verts2d': verts2d}
    paramsDict = {'scale': scale, 'trans2d': trans2d, 'root_rel': root_rel}
    handDictList = [{'verts3d': verts3d, 'verts2d': verts2d}]
    otherInfo = {'root_rel': root_rel,
                 'mano_pose_rotmat': {'left': rotmat[0], 'right': rotmat[1]},
                 'mano_shape': {'left': shp[0], 'right': shp[1]}}
    return result, paramsDict, handDictList, otherInfo


if __name__ == "__main__":
    root = jax.random.PRNGKey(0)
    k_param, kx, kf = jax.random.split(root, 3)
    raw_params = init_params(k_param)
    packed = pack_params(raw_params)

    x = jax.random.normal(kx, (BS, GF_DIM), jnp.float32)
    kfs = jax.random.split(kf, 4)
    fmaps = [
        jax.random.normal(kfs[0], (BS, 16, 8, 8), jnp.float32),
        jax.random.normal(kfs[1], (BS, 16, 16, 16), jnp.float32),
        jax.random.normal(kfs[2], (BS, 16, 32, 32), jnp.float32),
        jax.random.normal(kfs[3], (BS, 16, 64, 64), jnp.float32),
    ]

    outputs = decoder_forward(packed, x, fmaps)
    outputs = jax.block_until_ready(outputs)
    print("KERNEL_OK")
</pallas_src>

<mosaic_0001>
module attributes {stable_mosaic.version = 11 : i64} {
  func.func @_decoder_fused_kernel(%arg0: memref<2x64xf32, #tpu.memory_space<vmem>>, %arg1: memref<2x64x32xf32, #tpu.memory_space<vmem>>, %arg2: memref<8x32xf32, #tpu.memory_space<vmem>>, %arg3: memref<8x32xf32, #tpu.memory_space<vmem>>, %arg4: memref<8x32xf32, #tpu.memory_space<vmem>>, %arg5: memref<32x32xf32, #tpu.memory_space<vmem>>, %arg6: memref<128x8xf32, #tpu.memory_space<vmem>>, %arg7: memref<128x32xf32, #tpu.memory_space<vmem>>, %arg8: memref<32x6xf32, #tpu.memory_space<vmem>>, %arg9: memref<1x6xf32, #tpu.memory_space<vmem>>, %arg10: memref<4x128xf32, #tpu.memory_space<vmem>>, %arg11: memref<1x6xf32, #tpu.memory_space<vmem>>, %arg12: memref<480x128xf32, #tpu.memory_space<vmem>>, %arg13: memref<480x6xf32, #tpu.memory_space<vmem>>, %arg14: memref<32x256xbf16, #tpu.memory_space<vmem>>, %arg15: memref<8x256xf32, #tpu.memory_space<vmem>>, %arg16: memref<256x128xbf16, #tpu.memory_space<vmem>>, %arg17: memref<1x128xf32, #tpu.memory_space<vmem>>, %arg18: memref<128x128xbf16, #tpu.memory_space<vmem>>, %arg19: memref<1x128xf32, #tpu.memory_space<vmem>>, %arg20: memref<128x106xbf16, #tpu.memory_space<vmem>>, %arg21: memref<1x106xf32, #tpu.memory_space<vmem>>, %arg22: memref<128x6xf32, #tpu.memory_space<vmem>>, %arg23: memref<4x6xf32, #tpu.memory_space<vmem>>, %arg24: memref<480x6xf32, #tpu.memory_space<vmem>>, %arg25: memref<8x106xf32, #tpu.memory_space<vmem>>) attributes {dimension_semantics = [], scalar_prefetch = 0 : i64, scratch_operands = 0 : i64, tpu.core_type = #tpu.core_type<tc>} {
    %c0 = arith.constant 0 : index
    %c0_0 = arith.constant 0 : index
    %0 = vector.load %arg0[%c0, %c0_0] : memref<2x64xf32, #tpu.memory_space<vmem>>, vector<2x64xf32>
    %c0_1 = arith.constant 0 : index
    %c0_2 = arith.constant 0 : index
    %c0_3 = arith.constant 0 : index
    %1 = vector.load %arg1[%c0_1, %c0_2, %c0_3] : memref<2x64x32xf32, #tpu.memory_space<vmem>>, vector<1x64x32xf32>
    %2 = vector.shape_cast %1 : vector<1x64x32xf32> to vector<64x32xf32>
    %cst = arith.constant dense<0.000000e+00> : vector<2x32xf32>
    %3 = tpu.matmul %0, %2, %cst {dimension_numbers = #tpu.dot_dimension_numbers<[1], [0], [0], [1], [0, 0, 1, 1], [], []>} : vector<2x64xf32>, vector<64x32xf32>, vector<2x32xf32> -> vector<2x32xf32>
    %c1 = arith.constant 1 : index
    %c0_4 = arith.constant 0 : index
    %c0_5 = arith.constant 0 : index
    %4 = vector.load %arg1[%c1, %c0_4, %c0_5] : memref<2x64x32xf32, #tpu.memory_space<vmem>>, vector<1x64x32xf32>
    %5 = vector.shape_cast %4 : vector<1x64x32xf32> to vector<64x32xf32>
    %cst_6 = arith.constant dense<0.000000e+00> : vector<2x32xf32>
    %6 = tpu.matmul %0, %5, %cst_6 {dimension_numbers = #tpu.dot_dimension_numbers<[1], [0], [0], [1], [0, 0, 1, 1], [], []>} : vector<2x64xf32>, vector<64x32xf32>, vector<2x32xf32> -> vector<2x32xf32>
    %cst_7 = arith.constant 0.000000e+00 : f32
    %7 = vector.broadcast %cst_7 : f32 to vector<4x32xf32>
    %8 = tpu.concatenate %3, %6, %7 in 0 : vector<2x32xf32>, vector<2x32xf32>, vector<4x32xf32> -> vector<8x32xf32>
    %c0_8 = arith.constant 0 : index
    %c0_9 = arith.constant 0 : index
    %9 = vector.load %arg2[%c0_8, %c0_9] : memref<8x32xf32, #tpu.memory_space<vmem>>, vector<8x32xf32>
    %10 = arith.addf %8, %9 : vector<8x32xf32>
    %11 = tpu.iota {dimensions = array<i32: 1>} : vector<1x32xi32>
    %c29_i32 = arith.constant 29 : i32
    %12 = vector.broadcast %c29_i32 : i32 to vector<1x32xi32>
    %13 = arith.cmpi slt, %11, %12 : vector<1x32xi32>
    %cst_10 = arith.constant 0.000000e+00 : f32
    %14 = vector.shape_cast %13 : vector<1x32xi1> to vector<1x32xi1>
    %15 = vector.broadcast %14 : vector<1x32xi1> to vector<8x32xi1>
    %16 = vector.broadcast %cst_10 : f32 to vector<8x32xf32>
    %17 = arith.select %15, %10, %16 : vector<8x32xi1>, vector<8x32xf32>
    %cst_11 = arith.constant dense<0.000000e+00> : vector<8xf32>
    %18 = vector.multi_reduction <add>, %17, %cst_11 [1] : vector<8x32xf32> to vector<8xf32>
    %19 = vector.shape_cast %18 : vector<8xf32> to vector<8x1xf32>
    %cst_12 = arith.constant 0.0344827585 : f32
    %20 = vector.broadcast %cst_12 : f32 to vector<8x1xf32>
    %21 = arith.mulf %19, %20 : vector<8x1xf32>
    %22 = vector.broadcast %21 : vector<8x1xf32> to vector<8x32xf32>
    %23 = arith.subf %10, %22 : vector<8x32xf32>
    %cst_13 = arith.constant 0.000000e+00 : f32
    %24 = vector.shape_cast %13 : vector<1x32xi1> to vector<1x32xi1>
    %25 = vector.broadcast %24 : vector<1x32xi1> to vector<8x32xi1>
    %26 = vector.broadcast %cst_13 : f32 to vector<8x32xf32>
    %27 = arith.select %25, %23, %26 : vector<8x32xi1>, vector<8x32xf32>
    %28 = arith.mulf %27, %27 : vector<8x32xf32>
    %cst_14 = arith.constant dense<0.000000e+00> : vector<8xf32>
    %29 = vector.multi_reduction <add>, %28, %cst_14 [1] : vector<8x32xf32> to vector<8xf32>
    %30 = vector.shape_cast %29 : vector<8xf32> to vector<8x1xf32>
    %cst_15 = arith.constant 0.0344827585 : f32
    %31 = vector.broadcast %cst_15 : f32 to vector<8x1xf32>
    %32 = arith.mulf %30, %31 : vector<8x1xf32>
    %cst_16 = arith.constant 9.99999997E-7 : f32
    %33 = vector.broadcast %cst_16 : f32 to vector<8x1xf32>
    %34 = arith.addf %32, %33 : vector<8x1xf32>
    %35 = math.rsqrt %34 : vector<8x1xf32>
    %36 = vector.broadcast %35 : vector<8x1xf32> to vector<8x32xf32>
    %37 = arith.mulf %27, %36 : vector<8x32xf32>
    %c0_17 = arith.constant 0 : index
    %c0_18 = arith.constant 0 : index
    %38 = vector.load %arg3[%c0_17, %c0_18] : memref<8x32xf32, #tpu.memory_space<vmem>>, vector<8x32xf32>
    %39 = arith.mulf %37, %38 : vector<8x32xf32>
    %c0_19 = arith.constant 0 : index
    %c0_20 = arith.constant 0 : index
    %40 = vector.load %arg4[%c0_19, %c0_20] : memref<8x32xf32, #tpu.memory_space<vmem>>, vector<8x32xf32>
    %41 = arith.addf %39, %40 : vector<8x32xf32>
    %c0_21 = arith.constant 0 : index
    %c0_22 = arith.constant 0 : index
    %42 = vector.load %arg5[%c0_21, %c0_22] : memref<32x32xf32, #tpu.memory_space<vmem>>, vector<32x32xf32>
    %cst_23 = arith.constant dense<0.000000e+00> : vector<8x32xf32>
    %43 = tpu.matmul %41, %42, %cst_23 {dimension_numbers = #tpu.dot_dimension_numbers<[1], [0], [0], [1], [0, 0, 1, 1], [], []>} : vector<8x32xf32>, vector<32x32xf32>, vector<8x32xf32> -> vector<8x32xf32>
    %c0_24 = arith.constant 0 : index
    %c0_25 = arith.constant 0 : index
    %44 = vector.load %arg6[%c0_24, %c0_25] : memref<128x8xf32, #tpu.memory_space<vmem>>, vector<128x8xf32>
    %cst_26 = arith.constant dense<0.000000e+00> : vector<128x32xf32>
    %45 = tpu.matmul %44, %43, %cst_26 {dimension_numbers = #tpu.dot_dimension_numbers<[1], [0], [0], [1], [0, 0, 1, 1], [], []>} : vector<128x8xf32>, vector<8x32xf32>, vector<128x32xf32> -> vector<128x32xf32>
    %c0_27 = arith.constant 0 : index
    %c0_28 = arith.constant 0 : index
    %46 = vector.load %arg7[%c0_27, %c0_28] : memref<128x32xf32, #tpu.memory_space<vmem>>, vector<128x32xf32>
    %47 = arith.addf %45, %46 : vector<128x32xf32>
    %c0_29 = arith.constant 0 : index
    %c0_30 = arith.constant 0 : index
    %48 = vector.load %arg8[%c0_29, %c0_30] : memref<32x6xf32, #tpu.memory_space<vmem>>, vector<32x6xf32>
    %cst_31 = arith.constant dense<0.000000e+00> : vector<128x6xf32>
    %49 = tpu.matmul %47, %48, %cst_31 {dimension_numbers = #tpu.dot_dimension_numbers<[1], [0], [0], [1], [0, 0, 1, 1], [], []>} : vector<128x32xf32>, vector<32x6xf32>, vector<128x6xf32> -> vector<128x6xf32>
    %c0_32 = arith.constant 0 : index
    %c0_33 = arith.constant 0 : index
    %50 = vector.load %arg9[%c0_32, %c0_33] : memref<1x6xf32, #tpu.memory_space<vmem>>, vector<1x6xf32>
    %51 = vector.broadcast %50 : vector<1x6xf32> to vector<128x6xf32>
    %52 = arith.addf %49, %51 : vector<128x6xf32>
    %c0_34 = arith.constant 0 : index
    %c0_35 = arith.constant 0 : index
    %53 = vector.load %arg22[%c0_34, %c0_35] : memref<128x6xf32, #tpu.memory_space<vmem>>, vector<128x6xf32>
    tpu.vector_store %arg22[%c0_34, %c0_35], %52 {strides = array<i32>} : memref<128x6xf32, #tpu.memory_space<vmem>>, vector<128x6xf32>,
    %c0_36 = arith.constant 0 : index
    %c0_37 = arith.constant 0 : index
    %54 = vector.load %arg10[%c0_36, %c0_37] : memref<4x128xf32, #tpu.memory_space<vmem>>, vector<4x128xf32>
    %cst_38 = arith.constant dense<0.000000e+00> : vector<4x6xf32>
    %55 = tpu.matmul %54, %49, %cst_38 {dimension_numbers = #tpu.dot_dimension_numbers<[1], [0], [0], [1], [0, 0, 1, 1], [], []>} : vector<4x128xf32>, vector<128x6xf32>, vector<4x6xf32> -> vector<4x6xf32>
    %c0_39 = arith.constant 0 : index
    %c0_40 = arith.constant 0 : index
    %56 = vector.load %arg11[%c0_39, %c0_40] : memref<1x6xf32, #tpu.memory_space<vmem>>, vector<1x6xf32>
    %57 = vector.broadcast %56 : vector<1x6xf32> to vector<4x6xf32>
    %58 = arith.addf %55, %57 : vector<4x6xf32>
    %c0_41 = arith.constant 0 : index
    %c0_42 = arith.constant 0 : index
    %59 = vector.load %arg23[%c0_41, %c0_42] : memref<4x6xf32, #tpu.memory_space<vmem>>, vector<4x6xf32>
    tpu.vector_store %arg23[%c0_41, %c0_42], %58 {strides = array<i32>} : memref<4x6xf32, #tpu.memory_space<vmem>>, vector<4x6xf32>,
    %c0_43 = arith.constant 0 : index
    %c0_44 = arith.constant 0 : index
    %60 = vector.load %arg12[%c0_43, %c0_44] : memref<480x128xf32, #tpu.memory_space<vmem>>, vector<480x128xf32>
    %cst_45 = arith.constant dense<0.000000e+00> : vector<480x6xf32>
    %61 = tpu.matmul %60, %49, %cst_45 {dimension_numbers = #tpu.dot_dimension_numbers<[1], [0], [0], [1], [0, 0, 1, 1], [], []>} : vector<480x128xf32>, vector<128x6xf32>, vector<480x6xf32> -> vector<480x6xf32>
    %c0_46 = arith.constant 0 : index
    %c0_47 = arith.constant 0 : index
    %62 = vector.load %arg13[%c0_46, %c0_47] : memref<480x6xf32, #tpu.memory_space<vmem>>, vector<480x6xf32>
    %63 = arith.addf %61, %62 : vector<480x6xf32>
    %c0_48 = arith.constant 0 : index
    %c0_49 = arith.constant 0 : index
    %64 = vector.load %arg24[%c0_48, %c0_49] : memref<480x6xf32, #tpu.memory_space<vmem>>, vector<480x6xf32>
    tpu.vector_store %arg24[%c0_48, %c0_49], %63 {strides = array<i32>} : memref<480x6xf32, #tpu.memory_space<vmem>>, vector<480x6xf32>,
    %65 = arith.truncf %43 : vector<8x32xf32> to vector<8x32xbf16>
    %c0_50 = arith.constant 0 : index
    %c0_51 = arith.constant 0 : index
    %66 = vector.load %arg14[%c0_50, %c0_51] : memref<32x256xbf16, #tpu.memory_space<vmem>>, vector<32x256xbf16>
    %cst_52 = arith.constant dense<0.000000e+00> : vector<8x256xf32>
    %67 = tpu.matmul %65, %66, %cst_52 {dimension_numbers = #tpu.dot_dimension_numbers<[1], [0], [0], [1], [0, 0, 1, 1], [], []>} : vector<8x32xbf16>, vector<32x256xbf16>, vector<8x256xf32> -> vector<8x256xf32>
    %c0_53 = arith.constant 0 : index
    %c0_54 = arith.constant 0 : index
    %68 = vector.load %arg15[%c0_53, %c0_54] : memref<8x256xf32, #tpu.memory_space<vmem>>, vector<8x256xf32>
    %69 = arith.addf %67, %68 : vector<8x256xf32>
    %cst_55 = arith.constant 3.000000e+00 : f32
    %70 = vector.broadcast %cst_55 : f32 to vector<8x256xf32>
    %71 = arith.addf %69, %70 : vector<8x256xf32>
    %cst_56 = arith.constant 0.000000e+00 : f32
    %cst_57 = arith.constant 6.000000e+00 : f32
    %72 = vector.broadcast %cst_56 : f32 to vector<8x256xf32>
    %73 = arith.maximumf %72, %71 : vector<8x256xf32>
    %74 = vector.broadcast %cst_57 : f32 to vector<8x256xf32>
    %75 = arith.minimumf %74, %73 : vector<8x256xf32>
    %76 = arith.mulf %69, %75 : vector<8x256xf32>
    %cst_58 = arith.constant 0.166666672 : f32
    %77 = vector.broadcast %cst_58 : f32 to vector<8x256xf32>
    %78 = arith.mulf %76, %77 : vector<8x256xf32>
    %79 = arith.truncf %78 : vector<8x256xf32> to vector<8x256xbf16>
    %c0_59 = arith.constant 0 : index
    %c0_60 = arith.constant 0 : index
    %80 = vector.load %arg16[%c0_59, %c0_60] : memref<256x128xbf16, #tpu.memory_space<vmem>>, vector<256x128xbf16>
    %cst_61 = arith.constant dense<0.000000e+00> : vector<8x128xf32>
    %81 = tpu.matmul %79, %80, %cst_61 {dimension_numbers = #tpu.dot_dimension_numbers<[1], [0], [0], [1], [0, 0, 1, 1], [], []>} : vector<8x256xbf16>, vector<256x128xbf16>, vector<8x128xf32> -> vector<8x128xf32>
    %c0_62 = arith.constant 0 : index
    %c0_63 = arith.constant 0 : index
    %82 = vector.load %arg17[%c0_62, %c0_63] : memref<1x128xf32, #tpu.memory_space<vmem>>, vector<1x128xf32>
    %83 = vector.broadcast %82 : vector<1x128xf32> to vector<8x128xf32>
    %84 = arith.addf %81, %83 : vector<8x128xf32>
    %cst_64 = arith.constant 3.000000e+00 : f32
    %85 = vector.broadcast %cst_64 : f32 to vector<8x128xf32>
    %86 = arith.addf %84, %85 : vector<8x128xf32>
    %cst_65 = arith.constant 0.000000e+00 : f32
    %cst_66 = arith.constant 6.000000e+00 : f32
    %87 = vector.broadcast %cst_65 : f32 to vector<8x128xf32>
    %88 = arith.maximumf %87, %86 : vector<8x128xf32>
    %89 = vector.broadcast %cst_66 : f32 to vector<8x128xf32>
    %90 = arith.minimumf %89, %88 : vector<8x128xf32>
    %91 = arith.mulf %84, %90 : vector<8x128xf32>
    %cst_67 = arith.constant 0.166666672 : f32
    %92 = vector.broadcast %cst_67 : f32 to vector<8x128xf32>
    %93 = arith.mulf %91, %92 : vector<8x128xf32>
    %94 = arith.truncf %93 : vector<8x128xf32> to vector<8x128xbf16>
    %c0_68 = arith.constant 0 : index
    %c0_69 = arith.constant 0 : index
    %95 = vector.load %arg18[%c0_68, %c0_69] : memref<128x128xbf16, #tpu.memory_space<vmem>>, vector<128x128xbf16>
    %cst_70 = arith.constant dense<0.000000e+00> : vector<8x128xf32>
    %96 = tpu.matmul %94, %95, %cst_70 {dimension_numbers = #tpu.dot_dimension_numbers<[1], [0], [0], [1], [0, 0, 1, 1], [], []>} : vector<8x128xbf16>, vector<128x128xbf16>, vector<8x128xf32> -> vector<8x128xf32>
    %c0_71 = arith.constant 0 : index
    %c0_72 = arith.constant 0 : index
    %97 = vector.load %arg19[%c0_71, %c0_72] : memref<1x128xf32, #tpu.memory_space<vmem>>, vector<1x128xf32>
    %98 = vector.broadcast %97 : vector<1x128xf32> to vector<8x128xf32>
    %99 = arith.addf %96, %98 : vector<8x128xf32>
    %cst_73 = arith.constant 3.000000e+00 : f32
    %100 = vector.broadcast %cst_73 : f32 to vector<8x128xf32>
    %101 = arith.addf %99, %100 : vector<8x128xf32>
    %cst_74 = arith.constant 0.000000e+00 : f32
    %cst_75 = arith.constant 6.000000e+00 : f32
    %102 = vector.broadcast %cst_74 : f32 to vector<8x128xf32>
    %103 = arith.maximumf %102, %101 : vector<8x128xf32>
    %104 = vector.broadcast %cst_75 : f32 to vector<8x128xf32>
    %105 = arith.minimumf %104, %103 : vector<8x128xf32>
    %106 = arith.mulf %99, %105 : vector<8x128xf32>
    %cst_76 = arith.constant 0.166666672 : f32
    %107 = vector.broadcast %cst_76 : f32 to vector<8x128xf32>
    %108 = arith.mulf %106, %107 : vector<8x128xf32>
    %109 = arith.truncf %108 : vector<8x128xf32> to vector<8x128xbf16>
    %c0_77 = arith.constant 0 : index
    %c0_78 = arith.constant 0 : index
    %110 = vector.load %arg20[%c0_77, %c0_78] : memref<128x106xbf16, #tpu.memory_space<vmem>>, vector<128x106xbf16>
    %cst_79 = arith.constant dense<0.000000e+00> : vector<8x106xf32>
    %111 = tpu.matmul %109, %110, %cst_79 {dimension_numbers = #tpu.dot_dimension_numbers<[1], [0], [0], [1], [0, 0, 1, 1], [], []>} : vector<8x128xbf16>, vector<128x106xbf16>, vector<8x106xf32> -> vector<8x106xf32>
    %c0_80 = arith.constant 0 : index
    %c0_81 = arith.constant 0 : index
    %112 = vector.load %arg21[%c0_80, %c0_81] : memref<1x106xf32, #tpu.memory_space<vmem>>, vector<1x106xf32>
    %113 = vector.broadcast %112 : vector<1x106xf32> to vector<8x106xf32>
    %114 = arith.addf %111, %113 : vector<8x106xf32>
    %c0_82 = arith.constant 0 : index
    %c0_83 = arith.constant 0 : index
    %115 = vector.load %arg25[%c0_82, %c0_83] : memref<8x106xf32, #tpu.memory_space<vmem>>, vector<8x106xf32>
    tpu.vector_store %arg25[%c0_82, %c0_83], %114 {strides = array<i32>} : memref<8x106xf32, #tpu.memory_space<vmem>>, vector<8x106xf32>,
    return
  }
}

</mosaic_0001>

<bundles_post_ra>
// kernel: squeeze.40
= control target key start
LH: loop header
LB: loop body
LE: loop exit
PB: predicated region body
PF: predicated region fallthrough
CT: control target
= control target key end

     0   :  { %s186_s0 = inlined_call_operand.vmem [shape: f32[32,3,3], index: 0, kind: input, shape index: {}]   ;;  %s187_s1 = inlined_call_operand.hbm [shape: f32[2,16,3,3], index: 1, kind: output, shape index: {}]  }
   0x1   :  { %v130_v0 = vld [vmem:[%s186_s0 + $0x8] sm:$0xf]  ;;  %v131_v1 = vld [vmem:[%s186_s0 + $0x4] sm:$0xf]  ;;  %v15_v2 = vld [vmem:[%s186_s0] sm:$0xf] }
   0x2   :  { %10 = vst [vmem:[#allocation3 + $0x10] sm:$0xf] %v130_v0  ;;  %14 = vst [vmem:[#allocation3 + $0x8] sm:$0xf] %v131_v1 }
   0x3   :  { %16 = vst [vmem:[#allocation3] sm:$0xf] %v15_v2 }
   0x4   :  { %2 = vsyncpa [#allocation1], 0  ;;  %vm18_vm0 = vcmask 130048   ;;  %vm33_vm1 = vcmask 1047558   ;;  %s156_s0 = smov 112   ;;  %s157_s12 = smov [#allocation0]  }
   0x5   :  { %s116_s13 = sshll.u32 %s157_s12, 4  ;;  %s117_s13 = int_to_ptr.vmem [resolvable:$true] %s116_s13 }
   0x6   :  { %s134_s14 = scalar_lea.vmem %s117_s13, 288  ;;  %p139_p1 = scmp.lt.s32.totalorder %s117_s13, %s117_s13 }
   0x7   :  { %p135_p0 = scmp.ne.s32.totalorder %s117_s13, %s134_s14  ;;  %p140_p2 = scmp.lt.s32.totalorder %s134_s14, %s134_s14 }
   0x9   :  { %v21_v4 = vld [vmem:[#allocation3 + $0x8] sm:$0x7]   ;;  %v32_v5 = vld [vmem:[#allocation3 + $0xa] sm:$0xc0]   ;;  %v43_v9 = vld [vmem:[#allocation3 + $0x12] sm:$0x1]   ;;  %p141_p3 = por %p140_p2, %p139_p1 }
   0xa   :  { %v17_v3 = vld [vmem:[#allocation3] sm:$0x7]   ;;  %24 = vst.msk [vmem:[#allocation2 + $0x18] ss:$8 sm:$0x7] %vm18_vm0, %v21_v4  }
   0xb   :  { %19 = vst.msk [vmem:[#allocation2] ss:$8 sm:$0x7] %vm18_vm0, %v17_v3   ;;  %v30_v6 = vld.sshfl [vmem:[#allocation3] sm:$0xff pattern:$0xaaa98210]   ;;  %p142_p4 = pnand %p141_p3, %p135_p0 }
   0xc   :  { %v34_v7 = vsel %vm33_vm1, %v32_v5, %v30_v6  ;;  %v26_v8 = vld [vmem:[#allocation3 + $0x10] sm:$0x7]  }
   0xd   :  { %35 = vrot.lane.b32.xlu0 %v34_v7, %s156_s0  ;;  %29 = vst.msk [vmem:[#allocation2 + $0x30] ss:$8 sm:$0x7] %vm18_vm0, %v26_v8  }
  0x11   :  { %44 = vrot.lane.b32.xlu0 %v43_v9, %s156_s0 }
  0x7f   :  { %v36_v10 = vpop.permute.xlu0 %35  }
  0x80   :  { %39 = vst.msk [vmem:[#allocation2 + $0x1] ss:$8 sm:$0xf] %vm18_vm0, %v36_v10   ;;  %41 = vst.msk [vmem:[#allocation2 + $0x1] ss:$8 sm:$0xf0] %vm18_vm0, %v36_v10  }
  0x83   :  { %v45_v11 = vpop.permute.xlu0 %44  }
  0x84   :  { %48 = vst.msk [vmem:[#allocation2 + $0x41] sm:$0x1] %vm18_vm0, %v45_v11  }
  0x87   :  { %v53_v12 = vld [vmem:[#allocation2] sm:$0x3]  ;;  %v58_v13 = vld [vmem:[#allocation2 + $0x8] sm:$0x3]  ;;  %v64_v14 = vld [vmem:[#allocation2 + $0x10] sm:$0x3] }
  0x88   :  { %v71_v15 = vld [vmem:[#allocation2 + $0x18] sm:$0x3]  ;;  %v78_v16 = vld [vmem:[#allocation2 + $0x20] sm:$0x3]  ;;  %v85_v17 = vld [vmem:[#allocation2 + $0x28] sm:$0x3] }
  0x89   :  { %56 = vst [vmem:[#allocation0] sm:$0x3] %v53_v12  ;;  %62 = vst [vmem:[#allocation0 + $0x2] sm:$0x3] %v58_v13  ;;  %v92_v18 = vld [vmem:[#allocation2 + $0x30] sm:$0x3] }
  0x8a   :  { %69 = vst [vmem:[#allocation0 + $0x4] sm:$0x3] %v64_v14  ;;  %v99_v19 = vld [vmem:[#allocation2 + $0x38] sm:$0x3]  ;;  %76 = vst [vmem:[#allocation0 + $0x6] sm:$0x3] %v71_v15 }
  0x8b   :  { %83 = vst [vmem:[#allocation0 + $0x8] sm:$0x3] %v78_v16  ;;  %90 = vst [vmem:[#allocation0 + $0xa] sm:$0x3] %v85_v17  ;;  %v106_v20 = vld [vmem:[#allocation2 + $0x40] sm:$0x3] }
  0x8c   :  { %97 = vst [vmem:[#allocation0 + $0xc] sm:$0x3] %v92_v18  ;;  %104 = vst [vmem:[#allocation0 + $0xe] sm:$0x3] %v99_v19 }
  0x8d   :  { %111 = vst [vmem:[#allocation0 + $0x10] sm:$0x3] %v106_v20 }
  0x8e   :  { %145 = shalt.err (!%p142_p4)
}
  0x8f   :  { %119 = dma.vmem_to_hbm [thread:$0]  %s117_s13, 288, %s187_s1, [#allocation1]  }
  0x90   :  { %154 = dma.done.wait [#allocation1], 288  }
  0x91   :  { %155 = vsyncadd [#allocation1], 4294967008 }
  0x92   :  { %121 = vsyncpa [#allocation1], 1 }

// kernel: decoder_forward.1
= control target key start
LH: loop header
LB: loop body
LE: loop exit
PB: predicated region body
PF: predicated region fallthrough
CT: control target
= control target key end

     0   :  { %v2572_v0 = vmov 0.0   ;;  %vm85_vm0 = vcmask 523264   ;;  %vm2573_vm1 = vmmov 0   ;;  %v247_v18 = vlaneseq  ;;  %s3841_s1 = inlined_call_operand.vmem [shape: f32[2,64,32], index: 1, kind: input, shape index: {}]   ;;  %s3842_s0 = inlined_call_operand.vmem [shape: f32[2,64], index: 0, kind: input, shape index: {}]   ;;  %s3843_s2 = inlined_call_operand.vmem [shape: f32[8,32], index: 2, kind: input, shape index: {}]   ;;  %s3844_s5 = inlined_call_operand.vmem [shape: f32[32,32], index: 5, kind: input, shape index: {}]   ;;  %s3845_s3 = inlined_call_operand.vmem [shape: f32[8,32], index: 3, kind: input, shape index: {}]   ;;  %s3846_s4 = inlined_call_operand.vmem [shape: f32[8,32], index: 4, kind: input, shape index: {}]   ;;  %s3847_s6 = inlined_call_operand.vmem [shape: f32[128,8], index: 6, kind: input, shape index: {}]   ;;  %s3848_s8 = inlined_call_operand.vmem [shape: f32[32,6], index: 8, kind: input, shape index: {}]   ;;  %s3849_s7 = inlined_call_operand.vmem [shape: f32[128,32], index: 7, kind: input, shape index: {}]   ;;  %s3850_s14 = inlined_call_operand.vmem [shape: bf16[32,256], index: 14, kind: input, shape index: {}]   ;;  %s3851_s16 = inlined_call_operand.vmem [shape: bf16[256,128], index: 16, kind: input, shape index: {}]   ;;  %s3852_s9 = inlined_call_operand.vmem [shape: f32[1,6], index: 9, kind: input, shape index: {}]   ;;  %s3853_s22 = inlined_call_operand.vmem [shape: f32[128,6], index: 22, kind: output, shape index: {0}]   ;;  %s3854_s10 = inlined_call_operand.vmem [shape: f32[4,128], index: 10, kind: input, shape index: {}]   ;;  %s3855_s18 = inlined_call_operand.vmem [shape: bf16[128,128], index: 18, kind: input, shape index: {}]   ;;  %s3856_s11 = inlined_call_operand.vmem [shape: f32[1,6], index: 11, kind: input, shape index: {}]   ;;  %s3857_s23 = inlined_call_operand.vmem [shape: f32[4,6], index: 23, kind: output, shape index: {1}]   ;;  %s3858_s15 = inlined_call_operand.vmem [shape: f32[8,256], index: 15, kind: input, shape index: {}]   ;;  %s3859_s12 = inlined_call_operand.vmem [shape: f32[480,128], index: 12, kind: input, shape index: {}]   ;;  %s3860_s20 = inlined_call_operand.vmem [shape: bf16[128,106], index: 20, kind: input, shape index: {}]   ;;  %s3861_s17 = inlined_call_operand.vmem [shape: f32[1,128], index: 17, kind: input, shape index: {}]   ;;  %s3862_s13 = inlined_call_operand.vmem [shape: f32[480,6], index: 13, kind: input, shape index: {}]   ;;  %s3863_s24 = inlined_call_operand.vmem [shape: f32[480,6], index: 24, kind: output, shape index: {2}]   ;;  %s3864_s19 = inlined_call_operand.vmem [shape: f32[1,128], index: 19, kind: input, shape index: {}]   ;;  %s3865_s21 = inlined_call_operand.vmem [shape: f32[1,106], index: 21, kind: input, shape index: {}]   ;;  %s3866_s25 = inlined_call_operand.vmem [shape: f32[8,106], index: 25, kind: output, shape index: {3}]  }
   0x1   :  { %3873 = sst [smem:[#allocation2_spill]] %s3841_s1  ;;  %2225 = vmatprep.subr.mxu0 %v2572_v0  ;;  %2244 = vmatprep.subr.mxu1 %v2572_v0  ;;  %vm241_vm2 = vcmask 1041408   ;;  %vm243_vm3 = vcmask 1043456   ;;  %vm253_vm5 = vcmask 261120   ;;  %vm381_vm6 = vcmask 64512  }
   0x2   :  { %3874 = sst [smem:[#allocation3_spill]] %s3842_s0  ;;  %2241 = vmatprep.mubr.msk.f32.mxu0 %vm2573_vm1, %v2572_v0  ;;  %2260 = vmatprep.mubr.msk.f32.mxu1 %vm2573_vm1, %v2572_v0  ;;  %v248_v21 = vand.u32 127, %v247_v18  ;;  %vm795_vm7 = vcmask 48128   ;;  %vm890_vm8 = vcmask 44032   ;;  %vm1929_vm9 = vcmask 867328  }
   0x3   :  { %3875 = sst [smem:[#allocation4_spill]] %s3843_s2 }
   0x4   :  { %3876 = sst [smem:[#allocation5_spill]] %s3844_s5  ;;  %vm249_vm4 = vcmp.lt.s32.totalorder %v248_v21, 29 }
   0x5   :  { %3877 = sst [smem:[#allocation6_spill]] %s3845_s3 }
   0x6   :  { %3878 = sst [smem:[#allocation7_spill]] %s3846_s4 }
   0x7   :  { %3879 = sst [smem:[#allocation8_spill]] %s3847_s6 }
   0x8   :  { %3880 = sst [smem:[#allocation9_spill]] %s3848_s8 }
   0x9   :  { %3881 = sst [smem:[#allocation10_spill]] %s3849_s7 }
   0xa   :  { %3882 = sst [smem:[#allocation11_spill]] %s3850_s14 }
   0xb   :  { %s3883_s6 = sld [smem:[#allocation2_spill]] }
   0xc   :  { %s3884_s0 = sld [smem:[#allocation3_spill]] }
   0xd   :  { %s3885_s27 = sld [smem:[#allocation4_spill]] }
   0xe   :  { %s3886_s14 = sld [smem:[#allocation5_spill]] }
   0xf   :  { %s3890_s29 = sld [smem:[#allocation9_spill]] }
  0x10   :  { %s3891_s4 = sld [smem:[#allocation10_spill]] }
  0x11   :  { %v84_v1 = vld [vmem:[%s3883_s6 + $0x38] sm:$0xff]  ;;  %v83_v3 = vld [vmem:[%s3883_s6 + $0x30] sm:$0xff]  ;;  %v82_v5 = vld [vmem:[%s3883_s6 + $0x28] sm:$0xff] }
  0x12   :  { %v1955_v2 = vld [vmem:[%s3883_s6 + $0x78] sm:$0xff]  ;;  %2226 = vmatpush3.msra.mxu0 %v84_v1  ;;  %v1954_v4 = vld [vmem:[%s3883_s6 + $0x70] sm:$0xff]  ;;  %v1953_v6 = vld [vmem:[%s3883_s6 + $0x68] sm:$0xff] }
  0x13   :  { %2245 = vmatpush3.msra.mxu1 %v1955_v2  ;;  %2227 = vmatprep.subr.mxu0 %v2572_v0  ;;  %v81_v7 = vld [vmem:[%s3883_s6 + $0x20] sm:$0xff]  ;;  %v80_v9 = vld [vmem:[%s3883_s6 + $0x18] sm:$0xff]  ;;  %v79_v11 = vld [vmem:[%s3883_s6 + $0x10] sm:$0xff] }
  0x14   :  { %2246 = vmatprep.subr.mxu1 %v2572_v0  ;;  %2228 = vmatpush3.msra.mxu0 %v83_v3  ;;  %v1952_v8 = vld [vmem:[%s3883_s6 + $0x60] sm:$0xff]  ;;  %v1951_v10 = vld [vmem:[%s3883_s6 + $0x58] sm:$0xff]  ;;  %v1950_v12 = vld [vmem:[%s3883_s6 + $0x50] sm:$0xff] }
  0x15   :  { %2247 = vmatpush3.msra.mxu1 %v1954_v4  ;;  %2229 = vmatprep.subr.mxu0 %v2572_v0  ;;  %v78_v13 = vld [vmem:[%s3883_s6 + $0x8] sm:$0xff]  ;;  %v77_v15 = vld [vmem:[%s3883_s6] sm:$0xff]  ;;  %v275_v37 = vld [vmem:[%s3886_s14 + $0x18] sm:$0xff] }
  0x16   :  { %2248 = vmatprep.subr.mxu1 %v2572_v0  ;;  %2230 = vmatpush3.msra.mxu0 %v82_v5  ;;  %v1949_v14 = vld [vmem:[%s3883_s6 + $0x48] sm:$0xff]  ;;  %v1948_v16 = vld [vmem:[%s3883_s6 + $0x40] sm:$0xff]  ;;  %v274_v38 = vld [vmem:[%s3886_s14 + $0x10] sm:$0xff] }
  0x17   :  { %2249 = vmatpush3.msra.mxu1 %v1953_v6  ;;  %2231 = vmatprep.subr.mxu0 %v2572_v0  ;;  %v76_v17 = vld [vmem:[%s3884_s0] sm:$0x3]  ;;  %v273_v39 = vld [vmem:[%s3886_s14 + $0x8] sm:$0xff]  ;;  %s3887_s0 = sld [smem:[#allocation6_spill]]  ;;  %v578_v51 = vld [vmem:[%s3890_s29 + $0x18] sm:$0xff] }
  0x18   :  { %2250 = vmatprep.subr.mxu1 %v2572_v0  ;;  %2232 = vmatpush3.msra.mxu0 %v81_v7  ;;  %v245_v25 = vld [vmem:[%s3885_s27] sm:$0xff]  ;;  %s3888_s27 = sld [smem:[#allocation7_spill]]  ;;  %v577_v6 = vld [vmem:[%s3890_s29 + $0x10] sm:$0xff]  ;;  %v576_v7 = vld [vmem:[%s3890_s29 + $0x8] sm:$0xff] }
  0x19   :  { %2251 = vmatpush3.msra.mxu1 %v1952_v8  ;;  %2233 = vmatprep.subr.mxu0 %v2572_v0  ;;  %v272_v40 = vld [vmem:[%s3886_s14] sm:$0xff]  ;;  %s3889_s14 = sld [smem:[#allocation8_spill]] }
  0x1a   :  { %2252 = vmatprep.subr.mxu1 %v2572_v0  ;;  %2234 = vmatpush3.msra.mxu0 %v80_v9  ;;  %v575_v8 = vld [vmem:[%s3890_s29] sm:$0xff]  ;;  %s3892_s29 = sld [smem:[#allocation11_spill]] }
  0x1b   :  { %2253 = vmatpush3.msra.mxu1 %v1951_v10  ;;  %2235 = vmatprep.subr.mxu0 %v2572_v0  ;;  %v365_v10 = vld [vmem:[%s3891_s4] sm:$0xff] }
  0x1c   :  { %2254 = vmatprep.subr.mxu1 %v2572_v0  ;;  %2236 = vmatpush3.msra.mxu0 %v79_v11  ;;  %v366_v11 = vld [vmem:[%s3891_s4 + $0x8] sm:$0xff] }
  0x1d   :  { %2255 = vmatpush3.msra.mxu1 %v1950_v12  ;;  %2237 = vmatprep.subr.mxu0 %v2572_v0  ;;  %v268_v45 = vld [vmem:[%s3887_s0] sm:$0xff] }
  0x1e   :  { %2256 = vmatprep.subr.mxu1 %v2572_v0  ;;  %2238 = vmatpush3.msra.mxu0 %v78_v13  ;;  %v270_v47 = vld [vmem:[%s3888_s27] sm:$0xff] }
  0x1f   :  { %2257 = vmatpush3.msra.mxu1 %v1949_v14  ;;  %2239 = vmatprep.subr.mxu0 %v2572_v0  ;;  %v349_v50 = vld [vmem:[%s3889_s14] sm:$0xff]  ;;  %v350_v53 = vld [vmem:[%s3889_s14 + $0x8] sm:$0xff]  ;;  %v351_v54 = vld [vmem:[%s3889_s14 + $0x10] sm:$0xff] }
  0x20   :  { %2258 = vmatprep.subr.mxu1 %v2572_v0  ;;  %2240 = vmatpush3.msra.mxu0 %v77_v15  ;;  %v352_v56 = vld [vmem:[%s3889_s14 + $0x18] sm:$0xff]  ;;  %v353_v57 = vld [vmem:[%s3889_s14 + $0x20] sm:$0xff]  ;;  %v354_v58 = vld [vmem:[%s3889_s14 + $0x28] sm:$0xff] }
  0x21   :  { %2259 = vmatpush3.msra.mxu1 %v1948_v16  ;;  %2242 = vmatmul.mubr.msk.f32.vlgmr.msra.gmra.mxu0 %vm85_vm0, %v76_v17  ;;  %v355_v59 = vld [vmem:[%s3889_s14 + $0x30] sm:$0xff]  ;;  %v356_v60 = vld [vmem:[%s3889_s14 + $0x38] sm:$0xff]  ;;  %v357_v61 = vld [vmem:[%s3889_s14 + $0x40] sm:$0xff] }
  0x22   :  { %2261 = vmatmul.mubr.msk.f32.vlgmr.msra.gmra.mxu1 %vm85_vm0, %v76_v17  ;;  %2263 = vmatprep.subr.mxu1 %v2572_v0  ;;  %v358_v62 = vld [vmem:[%s3889_s14 + $0x48] sm:$0xff]  ;;  %v359_v63 = vld [vmem:[%s3889_s14 + $0x50] sm:$0xff]  ;;  %v360_v1 = vld [vmem:[%s3889_s14 + $0x58] sm:$0xff] }
  0x23   :  { %2271 = vmatprep.mubr.msk.f32.mxu1 %vm2573_vm1, %v2572_v0  ;;  %2264 = vmatpush3.msra.mxu1 %v275_v37  ;;  %v361_v2 = vld [vmem:[%s3889_s14 + $0x60] sm:$0xff]  ;;  %v362_v3 = vld [vmem:[%s3889_s14 + $0x68] sm:$0xff]  ;;  %v363_v4 = vld [vmem:[%s3889_s14 + $0x70] sm:$0xff] }
  0x24   :  { %2265 = vmatprep.subr.mxu1 %v2572_v0  ;;  %2300 = vmatprep.subr.mxu0 %v578_v51  ;;  %v364_v5 = vld [vmem:[%s3889_s14 + $0x78] sm:$0xff]  ;;  %v367_v16 = vld [vmem:[%s3891_s4 + $0x10] sm:$0xff] }
  0x25   :  { %2266 = vmatpush3.msra.mxu1 %v274_v38  ;;  %2301 = vmatpush3.msra.mxu0 %v578_v51  ;;  %v368_v17 = vld [vmem:[%s3891_s4 + $0x18] sm:$0xff] }
  0x26   :  { %2267 = vmatprep.subr.mxu1 %v2572_v0  ;;  %2302 = vmatprep.subr.mxu0 %v577_v6 }
  0x27   :  { %2268 = vmatpush3.msra.mxu1 %v273_v39  ;;  %2303 = vmatpush3.msra.mxu0 %v577_v6 }
  0x28   :  { %2269 = vmatprep.subr.mxu1 %v2572_v0  ;;  %2304 = vmatprep.subr.mxu0 %v576_v7 }
  0x29   :  { %2270 = vmatpush3.msra.mxu1 %v272_v40  ;;  %2305 = vmatpush3.msra.mxu0 %v576_v7  ;;  %v375_v40 = vld [vmem:[%s3891_s4 + $0x50] sm:$0xff] }
  0x2a   :  { %2306 = vmatprep.subr.mxu0 %v575_v8 }
  0x2b   :  { %2307 = vmatpush3.msra.mxu0 %v575_v8 }
  0xe1   :  { %v155_v19 = vpop.f32.mrf.mxu0 }
  0xe2   :  { %v234_v20 = vpop.f32.mrf.mxu1 }
  0xe3   :  { %v239_v22 = vrot.slane %v234_v20, 6  ;;  %v2243_v23 = vpop.f32.mrf.mxu0 }
  0xe4   :  { %v2262_v24 = vpop.f32.mrf.mxu1  ;;  %v370_v23 = vld [vmem:[%s3891_s4 + $0x28] sm:$0xff] }
  0xe5   :  { %v242_v26 = vsel %vm241_vm2, %v155_v19, %v239_v22  ;;  %v369_v22 = vld [vmem:[%s3891_s4 + $0x20] sm:$0xff] }
  0xe6   :  { %v244_v27 = vsel %vm243_vm3, %v242_v26, 0.0 }
  0xe7   :  { %v246_v28 = vadd.f32 %v245_v25, %v244_v27 }
  0xe9   :  { %v252_v29 = vsel %vm249_vm4, %v246_v28, 0.0 }
  0xea   :  { %v254_v30 = vsel %vm253_vm5, %v252_v29, 0.0  ;;  %v372_v29 = vld [vmem:[%s3891_s4 + $0x38] sm:$0xff] }
  0xeb   :  { %255 = vadd.xlane.f32.xlu0 %v254_v30 }
 0x174   :  { %v256_v31 = vpop.xlane.xlu0 %255 }
 0x175   :  { %v257_v32 = vmul.f32 0.03448276, %v256_v31 }
 0x177   :  { %v258_v33 = vsub.f32 %v246_v28, %v257_v32  ;;  %v371_v28 = vld [vmem:[%s3891_s4 + $0x30] sm:$0xff] }
 0x179   :  { %v259_v34 = vsel %vm249_vm4, %v258_v33, 0.0 }
 0x17a   :  { %v260_v35 = vmul.f32 %v259_v34, %v259_v34 }
 0x17c   :  { %v261_v36 = vsel %vm253_vm5, %v260_v35, 0.0  ;;  %v374_v35 = vld [vmem:[%s3891_s4 + $0x48] sm:$0xff] }
 0x17d   :  { %262 = vadd.xlane.f32.xlu0 %v261_v36 }
 0x206   :  { %v263_v41 = vpop.xlane.xlu0 %262 }
 0x207   :  { %v264_v42 = vmul.f32 0.03448276, %v263_v41  ;;  %v376_v41 = vld [vmem:[%s3891_s4 + $0x58] sm:$0xff] }
 0x209   :  { %v265_v43 = vadd.f32 1e-06, %v264_v42 }
 0x20b   :  { %2570 = vrsqrt.f32 %v265_v43 }
 0x218   :  { %v2571_v44 = vpop.eup %2570 }
 0x219   :  { %v267_v46 = vmul.f32 %v2571_v44, %v259_v34  ;;  %v373_v34 = vld [vmem:[%s3891_s4 + $0x40] sm:$0xff] }
 0x21b   :  { %v269_v48 = vmul.f32 %v268_v45, %v267_v46  ;;  %v377_v46 = vld [vmem:[%s3891_s4 + $0x60] sm:$0xff] }
 0x21d   :  { %v271_v49 = vadd.f32 %v270_v47, %v269_v48  ;;  %v378_v47 = vld [vmem:[%s3891_s4 + $0x68] sm:$0xff] }
 0x21f   :  { %2272 = vmatmul.mubr.msk.f32.vlgmr.msra.gmra.mxu1 %vm253_vm5, %v271_v49 }
 0x220   :  { %2276 = vmatprep.mubr.msk.f32.mxu1 %vm381_vm6, %v349_v50 }
 0x2df   :  { %v2813_v52 = vpop.f32.mrf.mxu1 }
 0x2e0   :  { %2274 = vmatprep.subr.mxu1 %v2813_v52 }
 0x2e1   :  { %v2273_v55 = vpop.f32.mrf.mxu1  ;;  %2275 = vmatpush3.msra.mxu1 %v2813_v52 }
 0x2e2   :  { %2277 = vmatmul.mubr.msk.f32.vlgmr.msra.gmra.mxu1 %vm381_vm6, %v350_v53  ;;  %2332 = vmatprep.subr.mxu1 %v2572_v0  ;;  %v379_v53 = vld [vmem:[%s3891_s4 + $0x70] sm:$0xff] }
 0x2e3   :  { %2279 = vmatprep.mubr.msk.f32.mxu1 %vm381_vm6, %v351_v54  ;;  %v380_v54 = vld [vmem:[%s3891_s4 + $0x78] sm:$0xff] }
 0x2e6   :  { %2280 = vmatmul.mubr.msk.f32.gmra.mxu1 %vm381_vm6, %v352_v56 }
 0x2e7   :  { %2282 = vmatprep.mubr.msk.f32.mxu1 %vm381_vm6, %v353_v57 }
 0x2ea   :  { %2283 = vmatmul.mubr.msk.f32.gmra.mxu1 %vm381_vm6, %v354_v58  ;;  %v1990_v58 = vld [vmem:[%s3852_s9] ss:$0 sm:$0xff] }
 0x2eb   :  { %2285 = vmatprep.mubr.msk.f32.mxu1 %vm381_vm6, %v355_v59 }
 0x2ee   :  { %2286 = vmatmul.mubr.msk.f32.gmra.mxu1 %vm381_vm6, %v356_v60 }
 0x2ef   :  { %2288 = vmatprep.mubr.msk.f32.mxu1 %vm381_vm6, %v357_v61 }
 0x2f2   :  { %2289 = vmatmul.mubr.msk.f32.gmra.mxu1 %vm381_vm6, %v358_v62 }
 0x2f3   :  { %2291 = vmatprep.mubr.msk.f32.mxu1 %vm381_vm6, %v359_v63 }
 0x2f6   :  { %2292 = vmatmul.mubr.msk.f32.gmra.mxu1 %vm381_vm6, %v360_v1 }
 0x2f7   :  { %2294 = vmatprep.mubr.msk.f32.mxu1 %vm381_vm6, %v361_v2 }
 0x2fa   :  { %2295 = vmatmul.mubr.msk.f32.gmra.mxu1 %vm381_vm6, %v362_v3 }
 0x2fb   :  { %2297 = vmatprep.mubr.msk.f32.mxu1 %vm381_vm6, %v363_v4 }
 0x2fe   :  { %2298 = vmatmul.mubr.msk.f32.gmra.mxu1 %vm381_vm6, %v364_v5 }
 0x2ff   :  { %2364 = vmatprep.mubr.msk.f32.mxu1 %vm2573_vm1, %v2572_v0 }
 0x3a2   :  { %v2278_v9 = vpop.f32.mrf.mxu1 }
 0x3a3   :  { %v502_v14 = vadd.f32 %v2278_v9, %v366_v11 }
 0x3a4   :  { %v496_v12 = vpop.f32.mrf.mxu1 }
 0x3a5   :  { %v497_v13 = vadd.f32 %v496_v12, %v365_v10 }
 0x3a6   :  { %v2281_v15 = vpop.f32.mrf.mxu1 }
 0x3a7   :  { %2308 = vmatprep.mubr.msk.f32.mxu0 %vm253_vm5, %v497_v13  ;;  %v512_v20 = vadd.f32 %v2281_v15, %v368_v17 }
 0x3a8   :  { %v506_v18 = vpop.f32.mrf.mxu1  ;;  %2309 = vmatmul.mubr.msk.f32.vlgmr.msra.gmra.mxu0 %vm253_vm5, %v502_v14 }
 0x3a9   :  { %v507_v19 = vadd.f32 %v506_v18, %v367_v16 }
 0x3aa   :  { %v2284_v21 = vpop.f32.mrf.mxu1 }
 0x3ab   :  { %2311 = vmatprep.mubr.msk.f32.mxu0 %vm253_vm5, %v507_v19  ;;  %v522_v26 = vadd.f32 %v2284_v21, %v370_v23 }
 0x3ac   :  { %v516_v24 = vpop.f32.mrf.mxu1  ;;  %2312 = vmatmul.mubr.msk.f32.gmra.mxu0 %vm253_vm5, %v512_v20 }
 0x3ad   :  { %v517_v25 = vadd.f32 %v516_v24, %v369_v22 }
 0x3ae   :  { %v2287_v27 = vpop.f32.mrf.mxu1 }
 0x3af   :  { %2314 = vmatprep.mubr.msk.f32.mxu0 %vm253_vm5, %v517_v25  ;;  %v532_v32 = vadd.f32 %v2287_v27, %v372_v29  ;;  %v2532_v29 = vld [vmem:[%s3892_s29 + $0x10] ss:$8 sps:$4 sm:$0xff]  }
 0x3b0   :  { %v526_v30 = vpop.f32.mrf.mxu1  ;;  %2315 = vmatmul.mubr.msk.f32.gmra.mxu0 %vm253_vm5, %v522_v26 }
 0x3b1   :  { %v527_v31 = vadd.f32 %v526_v30, %v371_v28  ;;  %v2534_v28 = vld [vmem:[%s3892_s29 + $0x14] ss:$8 sps:$4 sm:$0xff]   ;;  %v812_v30 = vld [vmem:[%s3854_s10] sm:$0xf] }
 0x3b2   :  { %v2290_v33 = vpop.f32.mrf.mxu1 }
 0x3b3   :  { %2317 = vmatprep.mubr.msk.f32.mxu0 %vm253_vm5, %v527_v31  ;;  %v542_v38 = vadd.f32 %v2290_v33, %v374_v35  ;;  %v2537_v31 = vld [vmem:[%s3892_s29 + $0x4] ss:$8 sps:$4 sm:$0xff]   ;;  %v2574_v33 = vmov 0   ;;  %v2539_v35 = vld [vmem:[%s3851_s16 + $0x38] sm:$0xff]  }
 0x3b4   :  { %v536_v36 = vpop.f32.mrf.mxu1  ;;  %2318 = vmatmul.mubr.msk.f32.gmra.mxu0 %vm253_vm5, %v532_v32  ;;  %v2535_v32 = vld [vmem:[%s3892_s29] ss:$8 sps:$4 sm:$0xff]  }
 0x3b5   :  { %v537_v37 = vadd.f32 %v536_v36, %v373_v34  ;;  %v2538_v34 = vld [vmem:[%s3851_s16 + $0x78] sm:$0xff]   ;;  %v1437_v36 = vpack.c.bf16 %v2813_v52, %v2813_v52  ;;  %v2543_v52 = vld [vmem:[%s3851_s16 + $0x28] sm:$0xff]  }
 0x3b6   :  { %v2293_v39 = vpop.f32.mrf.mxu1 }
 0x3b7   :  { %2320 = vmatprep.mubr.msk.f32.mxu0 %vm253_vm5, %v537_v37  ;;  %v552_v44 = vadd.f32 %v2293_v39, %v376_v41  ;;  %v2540_v37 = vld [vmem:[%s3851_s16 + $0x70] sm:$0xff]   ;;  %v2542_v39 = vld [vmem:[%s3851_s16 + $0x68] sm:$0xff]   ;;  %v2545_v41 = vld [vmem:[%s3851_s16 + $0x20] sm:$0xff]  }
 0x3b8   :  { %v546_v42 = vpop.f32.mrf.mxu1  ;;  %2321 = vmatmul.mubr.msk.f32.gmra.mxu0 %vm253_vm5, %v542_v38  ;;  %v2541_v38 = vld [vmem:[%s3851_s16 + $0x30] sm:$0xff]  }
 0x3b9   :  { %v547_v43 = vadd.f32 %v546_v42, %v375_v40  ;;  %v2544_v40 = vld [vmem:[%s3851_s16 + $0x60] sm:$0xff]   ;;  %v2546_v42 = vld [vmem:[%s3851_s16 + $0x58] sm:$0xff]  }
 0x3ba   :  { %v2296_v45 = vpop.f32.mrf.mxu1 }
 0x3bb   :  { %2323 = vmatprep.mubr.msk.f32.mxu0 %vm253_vm5, %v547_v43  ;;  %v562_v50 = vadd.f32 %v2296_v45, %v378_v47  ;;  %v2547_v43 = vld [vmem:[%s3851_s16 + $0x18] sm:$0xff]   ;;  %v2549_v45 = vld [vmem:[%s3851_s16 + $0x10] sm:$0xff]   ;;  %v2551_v47 = vld [vmem:[%s3851_s16 + $0x8] sm:$0xff]  }
 0x3bc   :  { %v556_v48 = vpop.f32.mrf.mxu1  ;;  %2324 = vmatmul.mubr.msk.f32.gmra.mxu0 %vm253_vm5, %v552_v44  ;;  %v2548_v44 = vld [vmem:[%s3851_s16 + $0x50] sm:$0xff]  }
 0x3bd   :  { %v557_v49 = vadd.f32 %v556_v48, %v377_v46  ;;  %v2550_v46 = vld [vmem:[%s3851_s16 + $0x48] sm:$0xff]   ;;  %v2552_v48 = vld [vmem:[%s3851_s16 + $0x40] sm:$0xff]  }
 0x3be   :  { %v2299_v51 = vpop.f32.mrf.mxu1 }
 0x3bf   :  { %2326 = vmatprep.mubr.msk.f32.mxu0 %vm253_vm5, %v557_v49  ;;  %v572_v57 = vadd.f32 %v2299_v51, %v380_v54  ;;  %v2553_v49 = vld [vmem:[%s3851_s16] sm:$0xff]  }
 0x3c0   :  { %v566_v55 = vpop.f32.mrf.mxu1  ;;  %2327 = vmatmul.mubr.msk.f32.gmra.mxu0 %vm253_vm5, %v562_v50  ;;  %v1991_v50 = vld [vmem:[%s3856_s11] ss:$0 sm:$0xff] }
 0x3c1   :  { %v567_v56 = vadd.f32 %v566_v55, %v379_v53  ;;  %v1442_v55 = vld [vmem:[%s3858_s15] sm:$0xff] }
 0x3c3   :  { %2329 = vmatprep.mubr.msk.f32.mxu0 %vm253_vm5, %v567_v56 }
 0x3c4   :  { %2330 = vmatmul.mubr.msk.f32.gmra.mxu0 %vm253_vm5, %v572_v57  ;;  %v1443_v57 = vld [vmem:[%s3858_s15 + $0x8] sm:$0xff] }
 0x468   :  { %v2956_v59 = vpop.f32.mrf.mxu0 }
 0x469   :  { %v780_v60 = vadd.f32 %v2956_v59, %v1990_v58 }
 0x46a   :  { %v2959_v61 = vpop.f32.mrf.mxu0 }
 0x46b   :  { %797 = vst.msk [vmem:[%s3853_s22 + $0x8] sm:$0xff] %vm795_vm7, %v780_v60  ;;  %v779_v62 = vadd.f32 %v1990_v58, %v2959_v61 }
 0x46c   :  { %v2966_v63 = vpop.f32.mrf.mxu0 }
 0x46d   :  { %796 = vst.msk [vmem:[%s3853_s22] sm:$0xff] %vm795_vm7, %v779_v62  ;;  %v782_v1 = vadd.f32 %v2966_v63, %v1990_v58 }
 0x46e   :  { %v2973_v2 = vpop.f32.mrf.mxu0 }
 0x46f   :  { %799 = vst.msk [vmem:[%s3853_s22 + $0x18] sm:$0xff] %vm795_vm7, %v782_v1  ;;  %v781_v3 = vadd.f32 %v1990_v58, %v2973_v2 }
 0x470   :  { %v2980_v4 = vpop.f32.mrf.mxu0 }
 0x471   :  { %798 = vst.msk [vmem:[%s3853_s22 + $0x10] sm:$0xff] %vm795_vm7, %v781_v3  ;;  %v784_v5 = vadd.f32 %v2980_v4, %v1990_v58 }
 0x472   :  { %v2987_v6 = vpop.f32.mrf.mxu0 }
 0x473   :  { %801 = vst.msk [vmem:[%s3853_s22 + $0x28] sm:$0xff] %vm795_vm7, %v784_v5  ;;  %v783_v7 = vadd.f32 %v1990_v58, %v2987_v6 }
 0x474   :  { %v2994_v8 = vpop.f32.mrf.mxu0 }
 0x475   :  { %800 = vst.msk [vmem:[%s3853_s22 + $0x20] sm:$0xff] %vm795_vm7, %v783_v7  ;;  %v786_v9 = vadd.f32 %v2994_v8, %v1990_v58 }
 0x476   :  { %v3001_v10 = vpop.f32.mrf.mxu0 }
 0x477   :  { %803 = vst.msk [vmem:[%s3853_s22 + $0x38] sm:$0xff] %vm795_vm7, %v786_v9  ;;  %v785_v11 = vadd.f32 %v1990_v58, %v3001_v10 }
 0x478   :  { %v2322_v12 = vpop.f32.mrf.mxu0 }
 0x479   :  { %802 = vst.msk [vmem:[%s3853_s22 + $0x30] sm:$0xff] %vm795_vm7, %v785_v11  ;;  %v788_v13 = vadd.f32 %v2322_v12, %v1990_v58  ;;  %v2554_v11 = vld [vmem:[%s3855_s18 + $0x38] sm:$0xff]  }
 0x47a   :  { %v733_v14 = vpop.f32.mrf.mxu0 }
 0x47b   :  { %805 = vst.msk [vmem:[%s3853_s22 + $0x48] sm:$0xff] %vm795_vm7, %v788_v13  ;;  %v787_v15 = vadd.f32 %v1990_v58, %v733_v14  ;;  %v2555_v13 = vld [vmem:[%s3855_s18 + $0x30] sm:$0xff]  }
 0x47c   :  { %v2325_v16 = vpop.f32.mrf.mxu0 }
 0x47d   :  { %804 = vst.msk [vmem:[%s3853_s22 + $0x40] sm:$0xff] %vm795_vm7, %v787_v15  ;;  %v790_v17 = vadd.f32 %v2325_v16, %v1990_v58  ;;  %v2557_v15 = vld [vmem:[%s3855_s18 + $0x20] sm:$0xff]  }
 0x47e   :  { %v743_v18 = vpop.f32.mrf.mxu0 }
 0x47f   :  { %807 = vst.msk [vmem:[%s3853_s22 + $0x58] sm:$0xff] %vm795_vm7, %v790_v17  ;;  %v789_v19 = vadd.f32 %v1990_v58, %v743_v18  ;;  %v2559_v17 = vld [vmem:[%s3855_s18 + $0x10] sm:$0xff]  }
 0x480   :  { %v2328_v20 = vpop.f32.mrf.mxu0 }
 0x481   :  { %806 = vst.msk [vmem:[%s3853_s22 + $0x50] sm:$0xff] %vm795_vm7, %v789_v19  ;;  %v792_v21 = vadd.f32 %v2328_v20, %v1990_v58  ;;  %v2561_v19 = vld [vmem:[%s3855_s18] sm:$0xff]  }
 0x482   :  { %v753_v22 = vpop.f32.mrf.mxu0 }
 0x483   :  { %809 = vst.msk [vmem:[%s3853_s22 + $0x68] sm:$0xff] %vm795_vm7, %v792_v21  ;;  %v791_v23 = vadd.f32 %v1990_v58, %v753_v22  ;;  %v893_v21 = vld [vmem:[%s3859_s12 + $0x8] sm:$0xff] }
 0x484   :  { %v2331_v24 = vpop.f32.mrf.mxu0 }
 0x485   :  { %808 = vst.msk [vmem:[%s3853_s22 + $0x60] sm:$0xff] %vm795_vm7, %v791_v23  ;;  %v794_v25 = vadd.f32 %v2331_v24, %v1990_v58  ;;  %2333 = vmatpush3.msra.mxu1 %v2331_v24  ;;  %2367 = vmatprep.subr.mxu0 %v2331_v24  ;;  %v895_v23 = vld [vmem:[%s3859_s12 + $0x18] sm:$0xff] }
 0x486   :  { %v763_v26 = vpop.f32.mrf.mxu0  ;;  %2334 = vmatprep.subr.mxu1 %v2572_v0  ;;  %2368 = vmatpush3.msra.mxu0 %v2331_v24  ;;  %v896_v24 = vld [vmem:[%s3859_s12 + $0x20] sm:$0xff] }
 0x487   :  { %811 = vst.msk [vmem:[%s3853_s22 + $0x78] sm:$0xff] %vm795_vm7, %v794_v25  ;;  %v793_v27 = vadd.f32 %v1990_v58, %v763_v26  ;;  %2335 = vmatpush3.msra.mxu1 %v763_v26  ;;  %2369 = vmatprep.subr.mxu0 %v763_v26  ;;  %v897_v25 = vld [vmem:[%s3859_s12 + $0x28] sm:$0xff] }
 0x488   :  { %2336 = vmatprep.subr.mxu1 %v2572_v0  ;;  %2370 = vmatpush3.msra.mxu0 %v763_v26  ;;  %v898_v26 = vld [vmem:[%s3859_s12 + $0x30] sm:$0xff] }
 0x489   :  { %810 = vst.msk [vmem:[%s3853_s22 + $0x70] sm:$0xff] %vm795_vm7, %v793_v27  ;;  %2337 = vmatpush3.msra.mxu1 %v2328_v20  ;;  %2371 = vmatprep.subr.mxu0 %v2328_v20  ;;  %v899_v27 = vld [vmem:[%s3859_s12 + $0x38] sm:$0xff] }
 0x48a   :  { %2338 = vmatprep.subr.mxu1 %v2572_v0  ;;  %2372 = vmatpush3.msra.mxu0 %v2328_v20  ;;  %v892_v20 = vld [vmem:[%s3859_s12] sm:$0xff] }
 0x48b   :  { %2339 = vmatpush3.msra.mxu1 %v753_v22  ;;  %2373 = vmatprep.subr.mxu0 %v753_v22 }
 0x48c   :  { %2340 = vmatprep.subr.mxu1 %v2572_v0  ;;  %2374 = vmatpush3.msra.mxu0 %v753_v22  ;;  %v894_v22 = vld [vmem:[%s3859_s12 + $0x10] sm:$0xff] }
 0x48d   :  { %2341 = vmatpush3.msra.mxu1 %v2325_v16  ;;  %2375 = vmatprep.subr.mxu0 %v2325_v16 }
 0x48e   :  { %2342 = vmatprep.subr.mxu1 %v2572_v0  ;;  %2376 = vmatpush3.msra.mxu0 %v2325_v16  ;;  %v2558_v16 = vld [vmem:[%s3855_s18 + $0x18] sm:$0xff]  }
 0x48f   :  { %2343 = vmatpush3.msra.mxu1 %v743_v18  ;;  %2377 = vmatprep.subr.mxu0 %v743_v18 }
 0x490   :  { %2344 = vmatprep.subr.mxu1 %v2572_v0  ;;  %2378 = vmatpush3.msra.mxu0 %v743_v18  ;;  %v2560_v18 = vld [vmem:[%s3855_s18 + $0x8] sm:$0xff]  }
 0x491   :  { %2345 = vmatpush3.msra.mxu1 %v2322_v12  ;;  %2379 = vmatprep.subr.mxu0 %v2322_v12 }
 0x492   :  { %2346 = vmatprep.subr.mxu1 %v2572_v0  ;;  %2380 = vmatpush3.msra.mxu0 %v2322_v12 }
 0x493   :  { %2347 = vmatpush3.msra.mxu1 %v733_v14  ;;  %2381 = vmatprep.subr.mxu0 %v733_v14 }
 0x494   :  { %2348 = vmatprep.subr.mxu1 %v2572_v0  ;;  %2382 = vmatpush3.msra.mxu0 %v733_v14  ;;  %v2556_v14 = vld [vmem:[%s3855_s18 + $0x28] sm:$0xff]  }
 0x495   :  { %2349 = vmatpush3.msra.mxu1 %v2994_v8  ;;  %2383 = vmatprep.subr.mxu0 %v2994_v8 }
 0x496   :  { %2350 = vmatprep.subr.mxu1 %v2572_v0  ;;  %2384 = vmatpush3.msra.mxu0 %v2994_v8 }
 0x497   :  { %2351 = vmatpush3.msra.mxu1 %v3001_v10  ;;  %2385 = vmatprep.subr.mxu0 %v3001_v10 }
 0x498   :  { %2352 = vmatprep.subr.mxu1 %v2572_v0  ;;  %2386 = vmatpush3.msra.mxu0 %v3001_v10 }
 0x499   :  { %2353 = vmatpush3.msra.mxu1 %v2980_v4  ;;  %2387 = vmatprep.subr.mxu0 %v2980_v4 }
 0x49a   :  { %2354 = vmatprep.subr.mxu1 %v2572_v0  ;;  %2388 = vmatpush3.msra.mxu0 %v2980_v4 }
 0x49b   :  { %2355 = vmatpush3.msra.mxu1 %v2987_v6  ;;  %2389 = vmatprep.subr.mxu0 %v2987_v6 }
 0x49c   :  { %2356 = vmatprep.subr.mxu1 %v2572_v0  ;;  %2390 = vmatpush3.msra.mxu0 %v2987_v6 }
 0x49d   :  { %2357 = vmatpush3.msra.mxu1 %v2966_v63  ;;  %2391 = vmatprep.subr.mxu0 %v2966_v63 }
 0x49e   :  { %2358 = vmatprep.subr.mxu1 %v2572_v0  ;;  %2392 = vmatpush3.msra.mxu0 %v2966_v63 }
 0x49f   :  { %2359 = vmatpush3.msra.mxu1 %v2973_v2  ;;  %2393 = vmatprep.subr.mxu0 %v2973_v2 }
 0x4a0   :  { %2360 = vmatprep.subr.mxu1 %v2572_v0  ;;  %2394 = vmatpush3.msra.mxu0 %v2973_v2 }
 0x4a1   :  { %2361 = vmatpush3.msra.mxu1 %v2956_v59  ;;  %2395 = vmatprep.subr.mxu0 %v2956_v59 }
 0x4a2   :  { %2362 = vmatprep.subr.mxu1 %v2572_v0  ;;  %2396 = vmatpush3.msra.mxu0 %v2956_v59 }
 0x4a3   :  { %2363 = vmatpush3.msra.mxu1 %v2959_v61  ;;  %2397 = vmatprep.subr.mxu0 %v2959_v61 }
 0x4a4   :  { %2398 = vmatpush3.msra.mxu0 %v2959_v61  ;;  %1479 = vmatprep.subr.bf16.mxu1 %v2534_v28  ;;  %v900_v28 = vld [vmem:[%s3859_s12 + $0x40] sm:$0xff] }
 0x4a5   :  { %2365 = vmatmul.mubr.f32.vlgmr.msra.gmra.mxu1 %v812_v30  ;;  %2399 = vmatprep.mubr.f32.mxu0 %v892_v20  ;;  %v902_v30 = vld [vmem:[%s3859_s12 + $0x50] sm:$0xff]  ;;  %v2562_v20 = vld [vmem:[%s3860_s20 + $0x38] sm:$0xff]  }
 0x4a6   :  { %1480 = vmatpush1.bf16.msra.mxu1 %v2532_v29  ;;  %1499 = vmatprep.mubr.bf16.mxu1 %v2574_v33  ;;  %v901_v29 = vld [vmem:[%s3859_s12 + $0x48] sm:$0xff] }
 0x4a7   :  { %1481 = vmatprep.subr.bf16.mxu1 %v2537_v31  ;;  %2400 = vmatmul.mubr.f32.vlgmr.msra.gmra.mxu0 %v893_v21  ;;  %v903_v31 = vld [vmem:[%s3859_s12 + $0x58] sm:$0xff]  ;;  %v905_v33 = vld [vmem:[%s3859_s12 + $0x68] sm:$0xff] }
 0x4a8   :  { %2402 = vmatprep.mubr.f32.mxu0 %v894_v22  ;;  %v2563_v22 = vld [vmem:[%s3860_s20 + $0x30] sm:$0xff]  }
 0x4aa   :  { %1482 = vmatpush1.bf16.msra.mxu1 %v2535_v32  ;;  %v904_v32 = vld [vmem:[%s3859_s12 + $0x60] sm:$0xff] }
 0x4ab   :  { %2185 = vmatprep.subr.bf16.mxu1 %v2538_v34  ;;  %2403 = vmatmul.mubr.f32.gmra.mxu0 %v895_v23  ;;  %v906_v34 = vld [vmem:[%s3859_s12 + $0x70] sm:$0xff]  ;;  %v2564_v23 = vld [vmem:[%s3860_s20 + $0x28] sm:$0xff]  }
 0x4ac   :  { %2405 = vmatprep.mubr.f32.mxu0 %v896_v24  ;;  %v2565_v24 = vld [vmem:[%s3860_s20 + $0x20] sm:$0xff]  }
 0x4ad   :  { %1996 = vmatmul.mubr.msk.bf16.vlgmr.msra.gmra.mxu1 %vm253_vm5, %v1437_v36  ;;  %v908_v36 = vld [vmem:[%s3859_s12 + $0x80] sm:$0xff] }
 0x4ae   :  { %2186 = vmatpush3.bf16.msra.mxu1 %v2539_v35  ;;  %v907_v35 = vld [vmem:[%s3859_s12 + $0x78] sm:$0xff] }
 0x4af   :  { %2187 = vmatprep.subr.bf16.mxu1 %v2540_v37  ;;  %2406 = vmatmul.mubr.f32.gmra.mxu0 %v897_v25  ;;  %v909_v37 = vld [vmem:[%s3859_s12 + $0x88] sm:$0xff]  ;;  %v943_v25 = vld [vmem:[%s3859_s12 + $0x198] sm:$0xff] }
 0x4b0   :  { %2408 = vmatprep.mubr.f32.mxu0 %v898_v26  ;;  %v2566_v26 = vld [vmem:[%s3860_s20 + $0x18] sm:$0xff]  }
 0x4b2   :  { %2188 = vmatpush3.bf16.msra.mxu1 %v2541_v38  ;;  %v910_v38 = vld [vmem:[%s3859_s12 + $0x90] sm:$0xff] }
 0x4b3   :  { %2189 = vmatprep.subr.bf16.mxu1 %v2542_v39  ;;  %2409 = vmatmul.mubr.f32.gmra.mxu0 %v899_v27  ;;  %v911_v39 = vld [vmem:[%s3859_s12 + $0x98] sm:$0xff]  ;;  %v944_v27 = vld [vmem:[%s3859_s12 + $0x1a0] sm:$0xff] }
 0x4b4   :  { %2411 = vmatprep.mubr.f32.mxu0 %v900_v28  ;;  %v945_v28 = vld [vmem:[%s3859_s12 + $0x1a8] sm:$0xff] }
 0x4b6   :  { %2190 = vmatpush3.bf16.msra.mxu1 %v2543_v52  ;;  %v912_v52 = vld [vmem:[%s3859_s12 + $0xa0] sm:$0xff] }
 0x4b7   :  { %2191 = vmatprep.subr.bf16.mxu1 %v2544_v40  ;;  %2412 = vmatmul.mubr.f32.gmra.mxu0 %v901_v29  ;;  %v913_v40 = vld [vmem:[%s3859_s12 + $0xa8] sm:$0xff]  ;;  %v2567_v29 = vld [vmem:[%s3860_s20 + $0x10] sm:$0xff]  }
 0x4b8   :  { %2414 = vmatprep.mubr.f32.mxu0 %v902_v30  ;;  %v946_v30 = vld [vmem:[%s3859_s12 + $0x1b0] sm:$0xff] }
 0x4ba   :  { %2192 = vmatpush3.bf16.msra.mxu1 %v2545_v41  ;;  %v914_v41 = vld [vmem:[%s3859_s12 + $0xb0] sm:$0xff] }
 0x4bb   :  { %2193 = vmatprep.subr.bf16.mxu1 %v2546_v42  ;;  %2415 = vmatmul.mubr.f32.gmra.mxu0 %v903_v31  ;;  %v915_v42 = vld [vmem:[%s3859_s12 + $0xb8] sm:$0xff] }
 0x4bc   :  { %2417 = vmatprep.mubr.f32.mxu0 %v904_v32  ;;  %v947_v31 = vld [vmem:[%s3859_s12 + $0x1b8] sm:$0xff]  ;;  %v2568_v32 = vld [vmem:[%s3860_s20 + $0x8] sm:$0xff]  }
 0x4be   :  { %2194 = vmatpush3.bf16.msra.mxu1 %v2547_v43  ;;  %v916_v43 = vld [vmem:[%s3859_s12 + $0xc0] sm:$0xff] }
 0x4bf   :  { %2195 = vmatprep.subr.bf16.mxu1 %v2548_v44  ;;  %2418 = vmatmul.mubr.f32.gmra.mxu0 %v905_v33  ;;  %v917_v44 = vld [vmem:[%s3859_s12 + $0xc8] sm:$0xff]  ;;  %v948_v33 = vld [vmem:[%s3859_s12 + $0x1c0] sm:$0xff] }
 0x4c0   :  { %2420 = vmatprep.mubr.f32.mxu0 %v906_v34  ;;  %v949_v34 = vld [vmem:[%s3859_s12 + $0x1c8] sm:$0xff] }
 0x4c2   :  { %2196 = vmatpush3.bf16.msra.mxu1 %v2549_v45  ;;  %v918_v45 = vld [vmem:[%s3859_s12 + $0xd0] sm:$0xff] }
 0x4c3   :  { %2197 = vmatprep.subr.bf16.mxu1 %v2550_v46  ;;  %2421 = vmatmul.mubr.f32.gmra.mxu0 %v907_v35  ;;  %v919_v46 = vld [vmem:[%s3859_s12 + $0xd8] sm:$0xff]  ;;  %v2569_v35 = vld [vmem:[%s3860_s20] sm:$0xff]  }
 0x4c4   :  { %2423 = vmatprep.mubr.f32.mxu0 %v908_v36  ;;  %v950_v36 = vld [vmem:[%s3859_s12 + $0x1d0] sm:$0xff] }
 0x4c6   :  { %2198 = vmatpush3.bf16.msra.mxu1 %v2551_v47  ;;  %v920_v47 = vld [vmem:[%s3859_s12 + $0xe0] sm:$0xff] }
 0x4c7   :  { %2199 = vmatprep.subr.bf16.mxu1 %v2552_v48  ;;  %2424 = vmatmul.mubr.f32.gmra.mxu0 %v909_v37  ;;  %v921_v48 = vld [vmem:[%s3859_s12 + $0xe8] sm:$0xff] }
 0x4c8   :  { %2426 = vmatprep.mubr.f32.mxu0 %v910_v38  ;;  %v953_v38 = vld [vmem:[%s3862_s13 + $0x8] sm:$0xff] }
 0x4ca   :  { %2200 = vmatpush3.bf16.msra.mxu1 %v2553_v49  ;;  %v922_v49 = vld [vmem:[%s3859_s12 + $0xf0] sm:$0xff] }
 0x4cb   :  { %2489 = vmatprep.subr.bf16.mxu1 %v2572_v0  ;;  %2427 = vmatmul.mubr.f32.gmra.mxu0 %v911_v39  ;;  %v952_v39 = vld [vmem:[%s3862_s13] sm:$0xff] }
 0x4cc   :  { %2429 = vmatprep.mubr.f32.mxu0 %v912_v52 }
 0x4cf   :  { %2430 = vmatmul.mubr.f32.gmra.mxu0 %v913_v40 }
 0x4d0   :  { %2432 = vmatprep.mubr.f32.mxu0 %v914_v41  ;;  %v955_v41 = vld [vmem:[%s3862_s13 + $0x18] sm:$0xff] }
 0x4d3   :  { %2433 = vmatmul.mubr.f32.gmra.mxu0 %v915_v42 }
 0x4d4   :  { %2435 = vmatprep.mubr.f32.mxu0 %v916_v43 }
 0x4d7   :  { %2436 = vmatmul.mubr.f32.gmra.mxu0 %v917_v44  ;;  %v954_v44 = vld [vmem:[%s3862_s13 + $0x10] sm:$0xff] }
 0x4d8   :  { %2438 = vmatprep.mubr.f32.mxu0 %v918_v45 }
 0x4db   :  { %2439 = vmatmul.mubr.f32.gmra.mxu0 %v919_v46 }
 0x4dc   :  { %2441 = vmatprep.mubr.f32.mxu0 %v920_v47  ;;  %v957_v47 = vld [vmem:[%s3862_s13 + $0x28] sm:$0xff] }
 0x4df   :  { %2442 = vmatmul.mubr.f32.gmra.mxu0 %v921_v48 }
 0x4e0   :  { %2444 = vmatprep.mubr.f32.mxu0 %v922_v49 }
 0x565   :  { %v886_v51 = vpop.f32.mrf.mxu1 }
 0x566   :  { %v887_v53 = vadd.f32 %v1991_v50, %v886_v51  ;;  %v923_v50 = vld [vmem:[%s3859_s12 + $0xf8] sm:$0xff]  ;;  %v924_v51 = vld [vmem:[%s3859_s12 + $0x100] sm:$0xff] }
 0x567   :  { %v2366_v54 = vpop.f32.mrf.mxu1  ;;  %2445 = vmatmul.mubr.f32.gmra.mxu0 %v923_v50  ;;  %v2401_v37 = vpop.f32.mrf.mxu0  ;;  %v956_v50 = vld [vmem:[%s3862_s13 + $0x20] sm:$0xff] }
 0x568   :  { %891 = vst.msk [vmem:[%s3857_s23] sm:$0xf] %vm890_vm8, %v887_v53  ;;  %2447 = vmatprep.mubr.f32.mxu0 %v924_v51  ;;  %v925_v53 = vld [vmem:[%s3859_s12 + $0x108] sm:$0xff]  ;;  %v926_v54 = vld [vmem:[%s3859_s12 + $0x110] sm:$0xff]  ;;  %v1084_v52 = vadd.f32 %v2401_v37, %v953_v38  ;;  %v975_v38 = vld [vmem:[%s3862_s13 + $0xb8] sm:$0xff] }
 0x569   :  { %v1078_v40 = vpop.f32.mrf.mxu0 }
 0x56a   :  { %v1079_v42 = vadd.f32 %v1078_v40, %v952_v39  ;;  %1378 = vst.msk [vmem:[%s3863_s24 + $0x8] sm:$0xff] %vm795_vm7, %v1084_v52  ;;  %v974_v40 = vld [vmem:[%s3862_s13 + $0xb0] sm:$0xff] }
 0x56b   :  { %2448 = vmatmul.mubr.f32.gmra.mxu0 %v925_v53  ;;  %v2404_v43 = vpop.f32.mrf.mxu0 }
 0x56c   :  { %2450 = vmatprep.mubr.f32.mxu0 %v926_v54  ;;  %1377 = vst.msk [vmem:[%s3863_s24] sm:$0xff] %vm795_vm7, %v1079_v42  ;;  %v1094_v45 = vadd.f32 %v2404_v43, %v955_v41  ;;  %v959_v54 = vld [vmem:[%s3862_s13 + $0x38] sm:$0xff]  ;;  %v977_v43 = vld [vmem:[%s3862_s13 + $0xc8] sm:$0xff] }
 0x56d   :  { %v1501_v56 = vpop.f32.mrf.mxu1  ;;  %v1088_v46 = vpop.f32.mrf.mxu0 }
 0x56e   :  { %v1502_v58 = vadd.f32 %v1501_v56, %v1442_v55  ;;  %v927_v55 = vld [vmem:[%s3859_s12 + $0x118] sm:$0xff]  ;;  %v928_v56 = vld [vmem:[%s3859_s12 + $0x120] sm:$0xff]  ;;  %1380 = vst.msk [vmem:[%s3863_s24 + $0x18] sm:$0xff] %vm795_vm7, %v1094_v45  ;;  %v1089_v48 = vadd.f32 %v1088_v46, %v954_v44 }
 0x56f   :  { %v1503_v59 = vpop.f32.mrf.mxu1  ;;  %2451 = vmatmul.mubr.f32.gmra.mxu0 %v927_v55  ;;  %v2407_v49 = vpop.f32.mrf.mxu0  ;;  %v976_v46 = vld [vmem:[%s3862_s13 + $0xc0] sm:$0xff] }
 0x570   :  { %v1508_v60 = vadd.f32 3.0, %v1502_v58  ;;  %v1504_v61 = vadd.f32 %v1503_v59, %v1443_v57  ;;  %2453 = vmatprep.mubr.f32.mxu0 %v928_v56  ;;  %v929_v57 = vld [vmem:[%s3859_s12 + $0x128] sm:$0xff]  ;;  %v931_v59 = vld [vmem:[%s3859_s12 + $0x138] sm:$0xff]  ;;  %1379 = vst.msk [vmem:[%s3863_s24 + $0x10] sm:$0xff] %vm795_vm7, %v1089_v48  ;;  %v1104_v51 = vadd.f32 %v2407_v49, %v957_v47 }
 0x571   :  { %v1505_v62 = vpop.f32.mrf.mxu1  ;;  %v1098_v53 = vpop.f32.mrf.mxu0  ;;  %v979_v49 = vld [vmem:[%s3862_s13 + $0xd8] sm:$0xff] }
 0x572   :  { %v1510_v63 = vmax.f32 %v1508_v60, 0.0  ;;  %v1509_v1 = vadd.f32 3.0, %v1504_v61  ;;  %v932_v60 = vld [vmem:[%s3859_s12 + $0x140] sm:$0xff]  ;;  %v934_v62 = vld [vmem:[%s3859_s12 + $0x150] sm:$0xff]  ;;  %1382 = vst.msk [vmem:[%s3863_s24 + $0x28] sm:$0xff] %vm795_vm7, %v1104_v51  ;;  %v1099_v55 = vadd.f32 %v1098_v53, %v956_v50 }
 0x573   :  { %v1506_v2 = vpop.f32.mrf.mxu1  ;;  %2454 = vmatmul.mubr.f32.gmra.mxu0 %v929_v57  ;;  %v2410_v56 = vpop.f32.mrf.mxu0  ;;  %v958_v57 = vld [vmem:[%s3862_s13 + $0x30] sm:$0xff] }
 0x574   :  { %v1512_v3 = vmin.f32 %v1510_v63, 6.0  ;;  %v1511_v4 = vmax.f32 %v1509_v1, 0.0  ;;  %v935_v63 = vld [vmem:[%s3859_s12 + $0x158] sm:$0xff]  ;;  %v936_v1 = vld [vmem:[%s3859_s12 + $0x160] sm:$0xff]  ;;  %v937_v2 = vld [vmem:[%s3859_s12 + $0x168] sm:$0xff]  ;;  %1381 = vst.msk [vmem:[%s3863_s24 + $0x20] sm:$0xff] %vm795_vm7, %v1099_v55 }
 0x575   :  { %v978_v53 = vld [vmem:[%s3862_s13 + $0xd0] sm:$0xff] }
 0x576   :  { %v1514_v5 = vmul.f32 %v1512_v3, %v1502_v58  ;;  %v1513_v6 = vmin.f32 %v1511_v4, 6.0  ;;  %v930_v58 = vld [vmem:[%s3859_s12 + $0x130] sm:$0xff]  ;;  %v939_v4 = vld [vmem:[%s3859_s12 + $0x178] sm:$0xff] }
 0x577   :  { %2456 = vmatprep.mubr.f32.mxu0 %v930_v58  ;;  %v938_v3 = vld [vmem:[%s3859_s12 + $0x170] sm:$0xff]  ;;  %v1114_v58 = vadd.f32 %v2410_v56, %v959_v54  ;;  %v981_v56 = vld [vmem:[%s3862_s13 + $0xe8] sm:$0xff] }
 0x578   :  { %v1515_v7 = vmul.f32 %v1513_v6, %v1504_v61  ;;  %v1516_v8 = vmul.f32 0.16666667, %v1514_v5  ;;  %2457 = vmatmul.mubr.f32.gmra.mxu0 %v931_v59  ;;  %v933_v61 = vld [vmem:[%s3859_s12 + $0x148] sm:$0xff]  ;;  %v940_v5 = vld [vmem:[%s3859_s12 + $0x180] sm:$0xff]  ;;  %v1108_v59 = vpop.f32.mrf.mxu0 }
 0x579   :  { %2459 = vmatprep.mubr.f32.mxu0 %v932_v60  ;;  %v941_v6 = vld [vmem:[%s3859_s12 + $0x188] sm:$0xff]  ;;  %1384 = vst.msk [vmem:[%s3863_s24 + $0x38] sm:$0xff] %vm795_vm7, %v1114_v58 }
 0x57a   :  { %v1517_v9 = vmul.f32 0.16666667, %v1515_v7  ;;  %v1518_v12 = vpack.c.bf16 %v1516_v8, %v1516_v8  ;;  %v942_v7 = vld [vmem:[%s3859_s12 + $0x190] sm:$0xff]  ;;  %v961_v60 = vld [vmem:[%s3862_s13 + $0x48] sm:$0xff] }
 0x57c   :  { %v1519_v10 = vpack.c.bf16 %v1517_v9, %v1517_v9  ;;  %2460 = vmatmul.mubr.f32.gmra.mxu0 %v933_v61  ;;  %v1997_v9 = vld [vmem:[%s3861_s17] ss:$0 sm:$0xff]  ;;  %v1109_v61 = vadd.f32 %v1108_v59, %v958_v57 }
 0x57d   :  { %2462 = vmatprep.mubr.f32.mxu0 %v934_v62  ;;  %v2413_v62 = vpop.f32.mrf.mxu0  ;;  %v980_v59 = vld [vmem:[%s3862_s13 + $0xe0] sm:$0xff] }
 0x57e   :  { %1687 = vmatprep.mubr.bf16.mxu1 %v1519_v10  ;;  %1383 = vst.msk [vmem:[%s3863_s24 + $0x30] sm:$0xff] %vm795_vm7, %v1109_v61 }
 0x57f   :  { %1688 = vmatmul.mubr.bf16.vlgmr.msra.gmra.mxu1 %v1518_v12 }
 0x580   :  { %2490 = vmatpush3.bf16.msra.mxu1 %v2554_v11  ;;  %2505 = vmatprep.mubr.msk.bf16.mxu1 %vm2573_vm1, %v2572_v0 }
 0x581   :  { %2491 = vmatprep.subr.bf16.mxu1 %v2572_v0  ;;  %2463 = vmatmul.mubr.f32.gmra.mxu0 %v935_v63  ;;  %v960_v63 = vld [vmem:[%s3862_s13 + $0x40] sm:$0xff] }
 0x582   :  { %2465 = vmatprep.mubr.f32.mxu0 %v936_v1  ;;  %v1124_v1 = vadd.f32 %v2413_v62, %v961_v60  ;;  %v983_v62 = vld [vmem:[%s3862_s13 + $0xf8] sm:$0xff] }
 0x584   :  { %2492 = vmatpush3.bf16.msra.mxu1 %v2555_v13  ;;  %1386 = vst.msk [vmem:[%s3863_s24 + $0x48] sm:$0xff] %vm795_vm7, %v1124_v1 }
 0x585   :  { %2493 = vmatprep.subr.bf16.mxu1 %v2572_v0  ;;  %2466 = vmatmul.mubr.f32.gmra.mxu0 %v937_v2  ;;  %v1118_v2 = vpop.f32.mrf.mxu0 }
 0x586   :  { %2468 = vmatprep.mubr.f32.mxu0 %v938_v3  ;;  %v963_v3 = vld [vmem:[%s3862_s13 + $0x58] sm:$0xff] }
 0x588   :  { %2494 = vmatpush3.bf16.msra.mxu1 %v2556_v14 }
 0x589   :  { %2495 = vmatprep.subr.bf16.mxu1 %v2572_v0  ;;  %2469 = vmatmul.mubr.f32.gmra.mxu0 %v939_v4  ;;  %v1119_v4 = vadd.f32 %v1118_v2, %v960_v63  ;;  %v982_v2 = vld [vmem:[%s3862_s13 + $0xf0] sm:$0xff] }
 0x58a   :  { %2471 = vmatprep.mubr.f32.mxu0 %v940_v5  ;;  %v2416_v5 = vpop.f32.mrf.mxu0 }
 0x58b   :  { %1385 = vst.msk [vmem:[%s3863_s24 + $0x40] sm:$0xff] %vm795_vm7, %v1119_v4 }
 0x58c   :  { %2496 = vmatpush3.bf16.msra.mxu1 %v2557_v15 }
 0x58d   :  { %2497 = vmatprep.subr.bf16.mxu1 %v2572_v0  ;;  %2472 = vmatmul.mubr.f32.gmra.mxu0 %v941_v6  ;;  %v962_v6 = vld [vmem:[%s3862_s13 + $0x50] sm:$0xff] }
 0x58e   :  { %2474 = vmatprep.mubr.f32.mxu0 %v942_v7  ;;  %v1134_v7 = vadd.f32 %v2416_v5, %v963_v3  ;;  %v985_v5 = vld [vmem:[%s3862_s13 + $0x108] sm:$0xff] }
 0x590   :  { %2498 = vmatpush3.bf16.msra.mxu1 %v2558_v16  ;;  %1388 = vst.msk [vmem:[%s3863_s24 + $0x58] sm:$0xff] %vm795_vm7, %v1134_v7 }
 0x591   :  { %2499 = vmatprep.subr.bf16.mxu1 %v2572_v0  ;;  %2475 = vmatmul.mubr.f32.gmra.mxu0 %v943_v25 }
 0x592   :  { %2477 = vmatprep.mubr.f32.mxu0 %v944_v27  ;;  %v971_v27 = vld [vmem:[%s3862_s13 + $0x98] sm:$0xff] }
 0x594   :  { %2500 = vmatpush3.bf16.msra.mxu1 %v2559_v17 }
 0x595   :  { %2501 = vmatprep.subr.bf16.mxu1 %v2572_v0  ;;  %2478 = vmatmul.mubr.f32.gmra.mxu0 %v945_v28 }
 0x596   :  { %2480 = vmatprep.mubr.f32.mxu0 %v946_v30  ;;  %v970_v30 = vld [vmem:[%s3862_s13 + $0x90] sm:$0xff] }
 0x598   :  { %2502 = vmatpush3.bf16.msra.mxu1 %v2560_v18 }
 0x599   :  { %2503 = vmatprep.subr.bf16.mxu1 %v2572_v0  ;;  %2481 = vmatmul.mubr.f32.gmra.mxu0 %v947_v31 }
 0x59a   :  { %2483 = vmatprep.mubr.f32.mxu0 %v948_v33  ;;  %v973_v33 = vld [vmem:[%s3862_s13 + $0xa8] sm:$0xff] }
 0x59c   :  { %2504 = vmatpush3.bf16.msra.mxu1 %v2561_v19 }
 0x59d   :  { %2509 = vmatprep.subr.bf16.mxu1 %v2572_v0  ;;  %2484 = vmatmul.mubr.f32.gmra.mxu0 %v949_v34 }
 0x59e   :  { %2486 = vmatprep.mubr.f32.mxu0 %v950_v36  ;;  %v972_v36 = vld [vmem:[%s3862_s13 + $0xa0] sm:$0xff] }
 0x63f   :  { %v2201_v8 = vpop.f32.mrf.mxu1 }
 0x641   :  { %v2202_v10 = vpop.f32.mrf.mxu1 }
 0x642   :  { %v2203_v11 = vadd.f32 %v2202_v10, %v2201_v8  ;;  %v1128_v8 = vpop.f32.mrf.mxu0 }
 0x643   :  { %v2204_v12 = vpop.f32.mrf.mxu1  ;;  %v1129_v10 = vadd.f32 %v1128_v8, %v962_v6  ;;  %v984_v8 = vld [vmem:[%s3862_s13 + $0x100] sm:$0xff] }
 0x644   :  { %v1690_v13 = vadd.f32 %v2203_v11, %v1997_v9  ;;  %v965_v9 = vld [vmem:[%s3862_s13 + $0x68] sm:$0xff]  ;;  %v2419_v11 = vpop.f32.mrf.mxu0  ;;  %v964_v12 = vld [vmem:[%s3862_s13 + $0x60] sm:$0xff] }
 0x645   :  { %v2205_v14 = vpop.f32.mrf.mxu1  ;;  %1387 = vst.msk [vmem:[%s3863_s24 + $0x50] sm:$0xff] %vm795_vm7, %v1129_v10 }
 0x646   :  { %v1695_v15 = vadd.f32 3.0, %v1690_v13  ;;  %v1138_v14 = vpop.f32.mrf.mxu0 }
 0x648   :  { %v1696_v16 = vmax.f32 %v1695_v15, 0.0  ;;  %v967_v15 = vld [vmem:[%s3862_s13 + $0x78] sm:$0xff] }
 0x64a   :  { %v1697_v17 = vmin.f32 %v1696_v16, 6.0  ;;  %v1139_v16 = vadd.f32 %v1138_v14, %v964_v12  ;;  %v986_v14 = vld [vmem:[%s3862_s13 + $0x110] sm:$0xff] }
 0x64c   :  { %v1698_v18 = vmul.f32 %v1697_v17, %v1690_v13  ;;  %v1144_v13 = vadd.f32 %v2419_v11, %v965_v9  ;;  %v2422_v17 = vpop.f32.mrf.mxu0  ;;  %1389 = vst.msk [vmem:[%s3863_s24 + $0x60] sm:$0xff] %vm795_vm7, %v1139_v16  ;;  %v987_v11 = vld [vmem:[%s3862_s13 + $0x118] sm:$0xff] }
 0x64e   :  { %v1699_v19 = vmul.f32 0.16666667, %v1698_v18  ;;  %1390 = vst.msk [vmem:[%s3863_s24 + $0x68] sm:$0xff] %vm795_vm7, %v1144_v13  ;;  %v966_v18 = vld [vmem:[%s3862_s13 + $0x70] sm:$0xff] }
 0x650   :  { %v1700_v21 = vpack.c.bf16 %v1699_v19, %v1699_v19  ;;  %v1154_v19 = vadd.f32 %v2422_v17, %v967_v15  ;;  %v989_v17 = vld [vmem:[%s3862_s13 + $0x128] sm:$0xff] }
 0x652   :  { %2506 = vmatmul.mubr.bf16.vlgmr.msra.gmra.mxu1 %v1700_v21  ;;  %v969_v21 = vld [vmem:[%s3862_s13 + $0x88] sm:$0xff]  ;;  %1392 = vst.msk [vmem:[%s3863_s24 + $0x78] sm:$0xff] %vm795_vm7, %v1154_v19 }
 0x653   :  { %2510 = vmatpush3.bf16.msra.mxu1 %v2562_v20  ;;  %2525 = vmatprep.mubr.msk.bf16.mxu1 %vm2573_vm1, %v2572_v0  ;;  %v1148_v20 = vpop.f32.mrf.mxu0 }
 0x654   :  { %2511 = vmatprep.subr.bf16.mxu1 %v2572_v0 }
 0x657   :  { %2512 = vmatpush3.bf16.msra.mxu1 %v2563_v22  ;;  %v1149_v22 = vadd.f32 %v1148_v20, %v966_v18  ;;  %v988_v20 = vld [vmem:[%s3862_s13 + $0x120] sm:$0xff] }
 0x658   :  { %2513 = vmatprep.subr.bf16.mxu1 %v2572_v0 }
 0x659   :  { %1391 = vst.msk [vmem:[%s3863_s24 + $0x70] sm:$0xff] %vm795_vm7, %v1149_v22 }
 0x65b   :  { %2514 = vmatpush3.bf16.msra.mxu1 %v2564_v23  ;;  %v2425_v23 = vpop.f32.mrf.mxu0 }
 0x65c   :  { %2515 = vmatprep.subr.bf16.mxu1 %v2572_v0  ;;  %v1164_v25 = vadd.f32 %v2425_v23, %v969_v21  ;;  %v991_v23 = vld [vmem:[%s3862_s13 + $0x138] sm:$0xff] }
 0x65e   :  { %1394 = vst.msk [vmem:[%s3863_s24 + $0x88] sm:$0xff] %vm795_vm7, %v1164_v25 }
 0x65f   :  { %2516 = vmatpush3.bf16.msra.mxu1 %v2565_v24  ;;  %v968_v24 = vld [vmem:[%s3862_s13 + $0x80] sm:$0xff] }
 0x660   :  { %2517 = vmatprep.subr.bf16.mxu1 %v2572_v0 }
 0x663   :  { %2518 = vmatpush3.bf16.msra.mxu1 %v2566_v26  ;;  %v1158_v26 = vpop.f32.mrf.mxu0 }
 0x664   :  { %2519 = vmatprep.subr.bf16.mxu1 %v2572_v0  ;;  %v1159_v28 = vadd.f32 %v1158_v26, %v968_v24  ;;  %v990_v26 = vld [vmem:[%s3862_s13 + $0x130] sm:$0xff] }
 0x666   :  { %1393 = vst.msk [vmem:[%s3863_s24 + $0x80] sm:$0xff] %vm795_vm7, %v1159_v28 }
 0x667   :  { %2520 = vmatpush3.bf16.msra.mxu1 %v2567_v29  ;;  %v2428_v29 = vpop.f32.mrf.mxu0 }
 0x668   :  { %2521 = vmatprep.subr.bf16.mxu1 %v2572_v0  ;;  %v1174_v31 = vadd.f32 %v2428_v29, %v971_v27  ;;  %v993_v29 = vld [vmem:[%s3862_s13 + $0x148] sm:$0xff] }
 0x66a   :  { %1396 = vst.msk [vmem:[%s3863_s24 + $0x98] sm:$0xff] %vm795_vm7, %v1174_v31 }
 0x66b   :  { %2522 = vmatpush3.bf16.msra.mxu1 %v2568_v32  ;;  %v1168_v32 = vpop.f32.mrf.mxu0 }
 0x66c   :  { %2523 = vmatprep.subr.bf16.mxu1 %v2572_v0  ;;  %v951_v0 = vld [vmem:[%s3859_s12 + $0x1d8] sm:$0xff]  ;;  %v1169_v34 = vadd.f32 %v1168_v32, %v970_v30  ;;  %v992_v32 = vld [vmem:[%s3862_s13 + $0x140] sm:$0xff] }
 0x66d   :  { %2487 = vmatmul.mubr.f32.gmra.mxu0 %v951_v0 }
 0x66e   :  { %1395 = vst.msk [vmem:[%s3863_s24 + $0x90] sm:$0xff] %vm795_vm7, %v1169_v34 }
 0x66f   :  { %2524 = vmatpush3.bf16.msra.mxu1 %v2569_v35  ;;  %v2431_v35 = vpop.f32.mrf.mxu0 }
 0x670   :  { %v1184_v0 = vadd.f32 %v2431_v35, %v973_v33  ;;  %v995_v35 = vld [vmem:[%s3862_s13 + $0x158] sm:$0xff] }
 0x671   :  { %v1178_v37 = vpop.f32.mrf.mxu0 }
 0x672   :  { %1398 = vst.msk [vmem:[%s3863_s24 + $0xa8] sm:$0xff] %vm795_vm7, %v1184_v0  ;;  %v1179_v39 = vadd.f32 %v1178_v37, %v972_v36  ;;  %v994_v37 = vld [vmem:[%s3862_s13 + $0x150] sm:$0xff] }
 0x673   :  { %v2434_v52 = vpop.f32.mrf.mxu0 }
 0x674   :  { %1397 = vst.msk [vmem:[%s3863_s24 + $0xa0] sm:$0xff] %vm795_vm7, %v1179_v39  ;;  %v1194_v41 = vadd.f32 %v2434_v52, %v975_v38  ;;  %v997_v52 = vld [vmem:[%s3862_s13 + $0x168] sm:$0xff] }
 0x675   :  { %v1188_v42 = vpop.f32.mrf.mxu0 }
 0x676   :  { %1400 = vst.msk [vmem:[%s3863_s24 + $0xb8] sm:$0xff] %vm795_vm7, %v1194_v41  ;;  %v1189_v44 = vadd.f32 %v1188_v42, %v974_v40  ;;  %v996_v42 = vld [vmem:[%s3862_s13 + $0x160] sm:$0xff] }
 0x677   :  { %v2437_v45 = vpop.f32.mrf.mxu0 }
 0x678   :  { %1399 = vst.msk [vmem:[%s3863_s24 + $0xb0] sm:$0xff] %vm795_vm7, %v1189_v44  ;;  %v1204_v47 = vadd.f32 %v2437_v45, %v977_v43  ;;  %v999_v45 = vld [vmem:[%s3862_s13 + $0x178] sm:$0xff] }
 0x679   :  { %v1198_v48 = vpop.f32.mrf.mxu0 }
 0x67a   :  { %1402 = vst.msk [vmem:[%s3863_s24 + $0xc8] sm:$0xff] %vm795_vm7, %v1204_v47  ;;  %v1199_v50 = vadd.f32 %v1198_v48, %v976_v46  ;;  %v998_v48 = vld [vmem:[%s3862_s13 + $0x170] sm:$0xff] }
 0x67b   :  { %v2440_v51 = vpop.f32.mrf.mxu0 }
 0x67c   :  { %1401 = vst.msk [vmem:[%s3863_s24 + $0xc0] sm:$0xff] %vm795_vm7, %v1199_v50  ;;  %v1214_v54 = vadd.f32 %v2440_v51, %v979_v49  ;;  %v1001_v51 = vld [vmem:[%s3862_s13 + $0x188] sm:$0xff] }
 0x67d   :  { %v1208_v55 = vpop.f32.mrf.mxu0 }
 0x67e   :  { %1404 = vst.msk [vmem:[%s3863_s24 + $0xd8] sm:$0xff] %vm795_vm7, %v1214_v54  ;;  %v1209_v57 = vadd.f32 %v1208_v55, %v978_v53  ;;  %v1000_v55 = vld [vmem:[%s3862_s13 + $0x180] sm:$0xff] }
 0x67f   :  { %v2443_v58 = vpop.f32.mrf.mxu0 }
 0x680   :  { %1403 = vst.msk [vmem:[%s3863_s24 + $0xd0] sm:$0xff] %vm795_vm7, %v1209_v57  ;;  %v1224_v60 = vadd.f32 %v2443_v58, %v981_v56 }
 0x681   :  { %v1218_v61 = vpop.f32.mrf.mxu0 }
 0x682   :  { %1406 = vst.msk [vmem:[%s3863_s24 + $0xe8] sm:$0xff] %vm795_vm7, %v1224_v60  ;;  %v1219_v63 = vadd.f32 %v1218_v61, %v980_v59  ;;  %v2014_v59 = vld [vmem:[%s3864_s19] ss:$0 sm:$0xff] }
 0x683   :  { %v2446_v1 = vpop.f32.mrf.mxu0 }
 0x684   :  { %1405 = vst.msk [vmem:[%s3863_s24 + $0xe0] sm:$0xff] %vm795_vm7, %v1219_v63  ;;  %v1234_v3 = vadd.f32 %v2446_v1, %v983_v62 }
 0x685   :  { %v1228_v4 = vpop.f32.mrf.mxu0 }
 0x686   :  { %1408 = vst.msk [vmem:[%s3863_s24 + $0xf8] sm:$0xff] %vm795_vm7, %v1234_v3  ;;  %v1229_v6 = vadd.f32 %v1228_v4, %v982_v2 }
 0x687   :  { %v2449_v7 = vpop.f32.mrf.mxu0 }
 0x688   :  { %1407 = vst.msk [vmem:[%s3863_s24 + $0xf0] sm:$0xff] %vm795_vm7, %v1229_v6  ;;  %v1244_v9 = vadd.f32 %v2449_v7, %v985_v5 }
 0x689   :  { %v1238_v10 = vpop.f32.mrf.mxu0 }
 0x68a   :  { %1410 = vst.msk [vmem:[%s3863_s24 + $0x108] sm:$0xff] %vm795_vm7, %v1244_v9  ;;  %v1239_v12 = vadd.f32 %v1238_v10, %v984_v8  ;;  %v1003_v8 = vld [vmem:[%s3862_s13 + $0x198] sm:$0xff]  ;;  %v1002_v10 = vld [vmem:[%s3862_s13 + $0x190] sm:$0xff] }
 0x68b   :  { %v2452_v13 = vpop.f32.mrf.mxu0 }
 0x68c   :  { %1409 = vst.msk [vmem:[%s3863_s24 + $0x100] sm:$0xff] %vm795_vm7, %v1239_v12  ;;  %v1254_v15 = vadd.f32 %v2452_v13, %v987_v11  ;;  %v1005_v13 = vld [vmem:[%s3862_s13 + $0x1a8] sm:$0xff] }
 0x68d   :  { %v1248_v16 = vpop.f32.mrf.mxu0 }
 0x68e   :  { %1412 = vst.msk [vmem:[%s3863_s24 + $0x118] sm:$0xff] %vm795_vm7, %v1254_v15  ;;  %v1249_v18 = vadd.f32 %v1248_v16, %v986_v14  ;;  %v1004_v16 = vld [vmem:[%s3862_s13 + $0x1a0] sm:$0xff] }
 0x68f   :  { %v2455_v19 = vpop.f32.mrf.mxu0 }
 0x690   :  { %1411 = vst.msk [vmem:[%s3863_s24 + $0x110] sm:$0xff] %vm795_vm7, %v1249_v18  ;;  %v1264_v21 = vadd.f32 %v2455_v19, %v989_v17  ;;  %v1007_v19 = vld [vmem:[%s3862_s13 + $0x1b8] sm:$0xff] }
 0x691   :  { %v1258_v22 = vpop.f32.mrf.mxu0 }
 0x692   :  { %1414 = vst.msk [vmem:[%s3863_s24 + $0x128] sm:$0xff] %vm795_vm7, %v1264_v21  ;;  %v1259_v24 = vadd.f32 %v1258_v22, %v988_v20  ;;  %v1006_v22 = vld [vmem:[%s3862_s13 + $0x1b0] sm:$0xff] }
 0x693   :  { %v2458_v25 = vpop.f32.mrf.mxu0 }
 0x694   :  { %1413 = vst.msk [vmem:[%s3863_s24 + $0x120] sm:$0xff] %vm795_vm7, %v1259_v24  ;;  %v1274_v27 = vadd.f32 %v2458_v25, %v991_v23  ;;  %v1009_v25 = vld [vmem:[%s3862_s13 + $0x1c8] sm:$0xff] }
 0x695   :  { %v1268_v28 = vpop.f32.mrf.mxu0 }
 0x696   :  { %1416 = vst.msk [vmem:[%s3863_s24 + $0x138] sm:$0xff] %vm795_vm7, %v1274_v27  ;;  %v1269_v30 = vadd.f32 %v1268_v28, %v990_v26  ;;  %v1008_v28 = vld [vmem:[%s3862_s13 + $0x1c0] sm:$0xff] }
 0x697   :  { %v2461_v31 = vpop.f32.mrf.mxu0 }
 0x698   :  { %1415 = vst.msk [vmem:[%s3863_s24 + $0x130] sm:$0xff] %vm795_vm7, %v1269_v30  ;;  %v1284_v33 = vadd.f32 %v2461_v31, %v993_v29 }
 0x699   :  { %v1278_v34 = vpop.f32.mrf.mxu0 }
 0x69a   :  { %1418 = vst.msk [vmem:[%s3863_s24 + $0x148] sm:$0xff] %vm795_vm7, %v1284_v33  ;;  %v1279_v36 = vadd.f32 %v1278_v34, %v992_v32  ;;  %v1011_v33 = vld [vmem:[%s3862_s13 + $0x1d8] sm:$0xff] }
 0x69b   :  { %v2464_v0 = vpop.f32.mrf.mxu0 }
 0x69c   :  { %1417 = vst.msk [vmem:[%s3863_s24 + $0x140] sm:$0xff] %vm795_vm7, %v1279_v36  ;;  %v1294_v38 = vadd.f32 %v2464_v0, %v995_v35  ;;  %v1010_v35 = vld [vmem:[%s3862_s13 + $0x1d0] sm:$0xff] }
 0x69d   :  { %v1288_v39 = vpop.f32.mrf.mxu0 }
 0x69e   :  { %1420 = vst.msk [vmem:[%s3863_s24 + $0x158] sm:$0xff] %vm795_vm7, %v1294_v38  ;;  %v1289_v40 = vadd.f32 %v1288_v39, %v994_v37  ;;  %v2023_v37 = vld [vmem:[%s3865_s21] ss:$0 sm:$0xff] }
 0x69f   :  { %v2467_v41 = vpop.f32.mrf.mxu0 }
 0x6a0   :  { %1419 = vst.msk [vmem:[%s3863_s24 + $0x150] sm:$0xff] %vm795_vm7, %v1289_v40  ;;  %v1304_v43 = vadd.f32 %v2467_v41, %v997_v52 }
 0x6a1   :  { %v1298_v44 = vpop.f32.mrf.mxu0 }
 0x6a2   :  { %1422 = vst.msk [vmem:[%s3863_s24 + $0x168] sm:$0xff] %vm795_vm7, %v1304_v43  ;;  %v1299_v46 = vadd.f32 %v1298_v44, %v996_v42 }
 0x6a3   :  { %v2470_v47 = vpop.f32.mrf.mxu0 }
 0x6a4   :  { %1421 = vst.msk [vmem:[%s3863_s24 + $0x160] sm:$0xff] %vm795_vm7, %v1299_v46  ;;  %v1314_v49 = vadd.f32 %v2470_v47, %v999_v45 }
 0x6a5   :  { %v1308_v50 = vpop.f32.mrf.mxu0 }
 0x6a6   :  { %1424 = vst.msk [vmem:[%s3863_s24 + $0x178] sm:$0xff] %vm795_vm7, %v1314_v49  ;;  %v1309_v53 = vadd.f32 %v1308_v50, %v998_v48 }
 0x6a7   :  { %v2473_v54 = vpop.f32.mrf.mxu0 }
 0x6a8   :  { %1423 = vst.msk [vmem:[%s3863_s24 + $0x170] sm:$0xff] %vm795_vm7, %v1309_v53  ;;  %v1324_v56 = vadd.f32 %v2473_v54, %v1001_v51 }
 0x6a9   :  { %v1318_v57 = vpop.f32.mrf.mxu0 }
 0x6aa   :  { %1426 = vst.msk [vmem:[%s3863_s24 + $0x188] sm:$0xff] %vm795_vm7, %v1324_v56  ;;  %v1319_v58 = vadd.f32 %v1318_v57, %v1000_v55 }
 0x6ab   :  { %v2476_v9 = vpop.f32.mrf.mxu0 }
 0x6ac   :  { %1425 = vst.msk [vmem:[%s3863_s24 + $0x180] sm:$0xff] %vm795_vm7, %v1319_v58  ;;  %v1334_v11 = vadd.f32 %v2476_v9, %v1003_v8 }
 0x6ad   :  { %v1328_v12 = vpop.f32.mrf.mxu0 }
 0x6ae   :  { %1428 = vst.msk [vmem:[%s3863_s24 + $0x198] sm:$0xff] %vm795_vm7, %v1334_v11  ;;  %v1329_v14 = vadd.f32 %v1328_v12, %v1002_v10 }
 0x6af   :  { %v2479_v15 = vpop.f32.mrf.mxu0 }
 0x6b0   :  { %1427 = vst.msk [vmem:[%s3863_s24 + $0x190] sm:$0xff] %vm795_vm7, %v1329_v14  ;;  %v1344_v17 = vadd.f32 %v2479_v15, %v1005_v13 }
 0x6b1   :  { %v1338_v18 = vpop.f32.mrf.mxu0 }
 0x6b2   :  { %1430 = vst.msk [vmem:[%s3863_s24 + $0x1a8] sm:$0xff] %vm795_vm7, %v1344_v17  ;;  %v1339_v20 = vadd.f32 %v1338_v18, %v1004_v16 }
 0x6b3   :  { %v2482_v21 = vpop.f32.mrf.mxu0 }
 0x6b4   :  { %1429 = vst.msk [vmem:[%s3863_s24 + $0x1a0] sm:$0xff] %vm795_vm7, %v1339_v20  ;;  %v1354_v23 = vadd.f32 %v2482_v21, %v1007_v19 }
 0x6b5   :  { %v1348_v24 = vpop.f32.mrf.mxu0 }
 0x6b6   :  { %1432 = vst.msk [vmem:[%s3863_s24 + $0x1b8] sm:$0xff] %vm795_vm7, %v1354_v23  ;;  %v1349_v26 = vadd.f32 %v1348_v24, %v1006_v22 }
 0x6b7   :  { %v2485_v27 = vpop.f32.mrf.mxu0 }
 0x6b8   :  { %1431 = vst.msk [vmem:[%s3863_s24 + $0x1b0] sm:$0xff] %vm795_vm7, %v1349_v26  ;;  %v1364_v29 = vadd.f32 %v2485_v27, %v1009_v25 }
 0x6b9   :  { %v1358_v30 = vpop.f32.mrf.mxu0 }
 0x6ba   :  { %1434 = vst.msk [vmem:[%s3863_s24 + $0x1c8] sm:$0xff] %vm795_vm7, %v1364_v29  ;;  %v1359_v31 = vadd.f32 %v1358_v30, %v1008_v28 }
 0x6bc   :  { %1433 = vst.msk [vmem:[%s3863_s24 + $0x1c0] sm:$0xff] %vm795_vm7, %v1359_v31 }
 0x712   :  { %v1806_v60 = vpop.f32.mrf.mxu1 }
 0x713   :  { %v1807_v61 = vadd.f32 %v2014_v59, %v1806_v60 }
 0x714   :  { %v2507_v62 = vpop.f32.mrf.mxu1 }
 0x715   :  { %v1812_v63 = vadd.f32 3.0, %v1807_v61 }
 0x716   :  { %v1809_v1 = vpop.f32.mrf.mxu1 }
 0x717   :  { %v1813_v2 = vmax.f32 %v1812_v63, 0.0 }
 0x718   :  { %v2508_v3 = vpop.f32.mrf.mxu1 }
 0x719   :  { %v1814_v4 = vmin.f32 %v1813_v2, 6.0 }
 0x71b   :  { %v1815_v5 = vmul.f32 %v1814_v4, %v1807_v61 }
 0x71d   :  { %v1816_v6 = vmul.f32 0.16666667, %v1815_v5 }
 0x71f   :  { %v1817_v7 = vpack.c.bf16 %v1816_v6, %v1816_v6 }
 0x721   :  { %2526 = vmatmul.mubr.bf16.vlgmr.msra.gmra.mxu1 %v1817_v7 }
 0x72d   :  { %v2488_v32 = vpop.f32.mrf.mxu0 }
 0x72e   :  { %v1374_v36 = vadd.f32 %v2488_v32, %v1011_v33 }
 0x72f   :  { %v1368_v34 = vpop.f32.mrf.mxu0 }
 0x730   :  { %v1369_v0 = vadd.f32 %v1368_v34, %v1010_v35  ;;  %1436 = vst.msk [vmem:[%s3863_s24 + $0x1d8] sm:$0xff] %vm795_vm7, %v1374_v36 }
 0x732   :  { %1435 = vst.msk [vmem:[%s3863_s24 + $0x1d0] sm:$0xff] %vm795_vm7, %v1369_v0 }
 0x7e1   :  { %v1923_v38 = vpop.f32.mrf.mxu1 }
 0x7e2   :  { %v1924_v39 = vadd.f32 %v2023_v37, %v1923_v38 }
 0x7e3   :  { %v2527_v52 = vpop.f32.mrf.mxu1 }
 0x7e4   :  { %1930 = vst.msk [vmem:[%s3866_s25] sm:$0xff] %vm1929_vm9, %v1924_v39 }
 0x7e5   :  { %v1926_v40 = vpop.f32.mrf.mxu1 }
 0x7e7   :  { %v2528_v41 = vpop.f32.mrf.mxu1 }

</bundles_post_ra>
